<compile_context>
chip_gen: v6e
topology: v6e:2x2x1
jax: 0.10.0
libtpu: 0.0.40
codegen_flags: <defaults>
</compile_context>

<pallas_src>
import jax
import jax.numpy as jnp
from jax import lax
from jax.experimental import pallas as pl
from jax.experimental.pallas import tpu as pltpu


def _rwkv_attn_kernel(x_ref,
                      mk_ref, cmk_ref, mv_ref, cmv_ref, mr_ref, cmr_ref,
                      wk_ref, bk_ref, wv_ref, bv_ref, wr_ref, br_ref,
                      wo_ref, bo_ref, w_ref, u_ref,
                      out_ref,
                      k_s, v_s, wkv_s, xr_s, aa_s, bb_s, pp_s, xprev_s):
    TU, BT, SZ = x_ref.shape           # time-chunk, batch-tile, padded size
    R = TU * BT
    ATT = aa_s.shape[-1]

    # (Re)initialize carried state at the first time chunk of each batch tile.
    @pl.when(pl.program_id(1) == 0)
    def _():
        xprev_s[...] = jnp.zeros_like(xprev_s)
        aa_s[...] = jnp.zeros_like(aa_s)
        bb_s[...] = jnp.zeros_like(bb_s)
        pp_s[...] = jnp.full_like(pp_s, -1e38)

    # Upcast the bf16 activation block once; time-major 2D view:
    # row t*BT + b  <->  (time t, batch b).
    x2d = x_ref[...].astype(jnp.float32).reshape(R, SZ)

    # Time shift: shifted[t, b] = x[t-1, b]; carried across time chunks via
    # xprev_s (zeros at the very first step -> ZeroPad2d((0,0,1,-1)) semantics).
    # Value-level concat = sublane shuffle; no scratch store+reload round trip.
    if R > BT:
        shifted = jnp.concatenate([xprev_s[...], x2d[:R - BT, :]], axis=0)
    else:
        shifted = xprev_s[...]
    xprev_s[...] = x2d[R - BT:, :]

    # Time-mix interpolations (f32 on VPU), cast to bf16 for the MXU.
    xk = (x2d * mk_ref[...] + shifted * cmk_ref[...]).astype(jnp.bfloat16)
    xv = (x2d * mv_ref[...] + shifted * cmv_ref[...]).astype(jnp.bfloat16)
    # Stage xr in scratch; its projection happens after the recurrence so no
    # large value is live across the unrolled loop.
    xr_s[...] = (x2d * mr_ref[...] + shifted * cmr_ref[...]).astype(jnp.bfloat16)

    # K/V projections on the MXU (bf16 operands, f32 accumulation).
    k_s[...] = jnp.dot(xk, wk_ref[...],
                       preferred_element_type=jnp.float32) + bk_ref[...]
    v_s[...] = jnp.dot(xv, wv_ref[...],
                       preferred_element_type=jnp.float32) + bv_ref[...]

    w = w_ref[...]     # (1, att) = -exp(time_decay), precomputed in wrapper
    u = u_ref[...]     # (1, att) = time_first

    # Numerically-stable WKV recurrence, vectorized over the (BT, att) tile.
    def body(t, carry):
        aa, bb, pp = carry
        off = pl.multiple_of(t * BT, BT)
        kk = k_s[pl.ds(off, BT), :]
        vv = v_s[pl.ds(off, BT), :]
        # output at step t
        ww = u + kk
        qq = jnp.maximum(pp, ww)
        e1 = jnp.exp(pp - qq)
        e2 = jnp.exp(ww - qq)
        num = e1 * aa + e2 * vv
        den = e1 * bb + e2
        # approx reciprocal on the EUP; fine for inference / 1e-3-level error.
        wkv_s[pl.ds(off, BT), :] = num * pl.reciprocal(den, approx=True)
        # state update
        ww2 = pp + w
        qq2 = jnp.maximum(ww2, kk)
        e1b = jnp.exp(ww2 - qq2)
        e2b = jnp.exp(kk - qq2)
        return (e1b * aa + e2b * vv, e1b * bb + e2b, qq2)

    # Adaptive unroll: keep (BT, ATT) temporaries within the 64-vreg file.
    if ATT <= 256:
        unroll = min(TU, 8)
    elif ATT <= 512:
        unroll = min(TU, 4)
    else:
        unroll = min(TU, 2)
    aa, bb, pp = lax.fori_loop(0, TU, body,
                               (aa_s[...], bb_s[...], pp_s[...]),
                               unroll=unroll)
    aa_s[...] = aa
    bb_s[...] = bb
    pp_s[...] = pp

    # Receptance projection + sigmoid + output projection AFTER the recurrence.
    r = jax.nn.sigmoid(
        jnp.dot(xr_s[...], wr_ref[...], preferred_element_type=jnp.float32)
        + br_ref[...])
    rwkv = (r * wkv_s[...]).astype(jnp.bfloat16)
    out = jnp.dot(rwkv, wo_ref[...],
                  preferred_element_type=jnp.float32) + bo_ref[...]
    out_ref[...] = out.reshape(TU, BT, SZ).astype(out_ref.dtype)


def _round_up(v, m):
    return (v + m - 1) // m * m


def _vmem_capacity_bytes():
    try:
        info = pltpu.get_tpu_info()
        cap = getattr(info, "vmem_capacity_bytes", None)
        if cap:
            return int(cap)
    except Exception:
        pass
    return 64 << 20     # conservative (v7x-sized) fallback


def _device_kind():
    try:
        return jax.devices()[0].device_kind.lower()
    except Exception:
        return ""


def encoder_self_attention(x, params, *, bt=8, tu=None):
    """Pallas forward of EncoderSelfAttention (state=None path). x: (B, U, size)."""
    f32, bf16 = jnp.float32, jnp.bfloat16
    B, U, size = x.shape
    att = params["time_decay"].shape[-1]

    size_p = _round_up(size, 128)
    att_p = _round_up(att, 128)
    B_p = _round_up(B, bt)

    vmem_cap = _vmem_capacity_bytes()
    if tu is None:
        kind = _device_kind()
        if "v5" in kind:
            tu = 16                      # 128x128 MXU -> M = 128; small VMEM budget
        elif vmem_cap <= (80 << 20):
            tu = 16                      # v7x-class (64 MiB VMEM): modest tiles
        else:
            tu = 32                      # v6e-class (128 MiB VMEM): M = 256
    tu = max(1, min(tu, U))
    U_p = _round_up(U, tu)
    R = tu * bt

    # Time-major, batch-tiled, lane-dense layout, streamed as bf16:
    # (U_p, B_p, size_p).  (Transpose+pad+cast fuse into one XLA op.)
    xt = jnp.transpose(x, (1, 0, 2)).astype(bf16)
    xt = jnp.pad(xt, ((0, U_p - U), (0, B_p - B), (0, size_p - size)))

    def vec(v, n):
        v = jnp.asarray(v, f32).reshape(-1)
        return jnp.pad(v, (0, n - v.shape[0])).reshape(1, n)

    def mat(m, r, c):
        m = jnp.asarray(m, f32)
        m = jnp.pad(m, ((0, r - m.shape[0]), (0, c - m.shape[1])))
        return m.astype(bf16)

    def mixvec(v):
        v = jnp.asarray(v, f32).reshape(-1)
        return (jnp.pad(v, (0, size_p - size)).reshape(1, size_p),
                jnp.pad(1.0 - v, (0, size_p - size)).reshape(1, size_p))

    mk, cmk = mixvec(params["time_mix_key"])
    mv, cmv = mixvec(params["time_mix_value"])
    mr, cmr = mixvec(params["time_mix_receptance"])

    wk = mat(params["w_key"], size_p, att_p)
    wv = mat(params["w_value"], size_p, att_p)
    wr = mat(params["w_receptance"], size_p, att_p)
    wo = mat(params["w_output"], att_p, size_p)
    bk = vec(params["b_key"], att_p)
    bv = vec(params["b_value"], att_p)
    br = vec(params["b_receptance"], att_p)
    bo = vec(params["b_output"], size_p)

    # Hoisted constants: w = -exp(time_decay), u = time_first.
    w_neg = vec(-jnp.exp(jnp.asarray(params["time_decay"], f32)), att_p)
    u = vec(params["time_first"], att_p)

    grid = (B_p // bt, U_p // tu)

    # Constant operands: index_map always (0, 0) -> single-buffer them.
    def const(shape):
        return pl.BlockSpec(shape, lambda b, t: (0, 0),
                            pipeline_mode=pl.Buffered(1))

    grid_spec = pltpu.PrefetchScalarGridSpec(
        num_scalar_prefetch=0,
        grid=grid,
        in_specs=[
            pl.BlockSpec((tu, bt, size_p), lambda b, t: (t, b, 0)),   # x (bf16)
            const((1, size_p)), const((1, size_p)),                   # mk, 1-mk
            const((1, size_p)), const((1, size_p)),                   # mv, 1-mv
            const((1, size_p)), const((1, size_p)),                   # mr, 1-mr
            const((size_p, att_p)), const((1, att_p)),                # Wk, bk
            const((size_p, att_p)), const((1, att_p)),                # Wv, bv
            const((size_p, att_p)), const((1, att_p)),                # Wr, br
            const((att_p, size_p)), const((1, size_p)),               # Wo, bo
            const((1, att_p)), const((1, att_p)),                     # w, u
        ],
        out_specs=pl.BlockSpec((tu, bt, size_p), lambda b, t: (t, b, 0)),
        scratch_shapes=[
            pltpu.VMEM((R, att_p), f32),     # k
            pltpu.VMEM((R, att_p), f32),     # v
            pltpu.VMEM((R, att_p), f32),     # wkv
            pltpu.VMEM((R, size_p), bf16),   # xr (staged for post-loop r-proj)
            pltpu.VMEM((bt, att_p), f32),    # aa
            pltpu.VMEM((bt, att_p), f32),    # bb
            pltpu.VMEM((bt, att_p), f32),    # pp
            pltpu.VMEM((bt, size_p), f32),   # x[t-1] carry across time chunks
        ],
    )

    # Explicit scoped-VMEM budget: single-buffered bf16 weights + double-
    # buffered bf16 x/out blocks + f32/bf16 scratch (+25% margin).
    weight_bytes = 4 * size_p * att_p * 2
    vec_bytes = 16 * 8 * max(size_p, att_p) * 4
    io_bytes = 2 * 2 * (R * size_p * 2)
    scratch_bytes = (3 * R * att_p * 4 + R * size_p * 2
                     + 3 * bt * att_p * 4 + bt * size_p * 4)
    needed = weight_bytes + vec_bytes + io_bytes + scratch_bytes
    vmem_limit = int(min(vmem_cap, max(32 << 20, int(needed * 1.25) + (2 << 20))))

    fn = pl.pallas_call(
        _rwkv_attn_kernel,
        out_shape=jax.ShapeDtypeStruct((U_p, B_p, size_p), bf16),
        grid_spec=grid_spec,
        compiler_params=pltpu.CompilerParams(
            dimension_semantics=("parallel", "arbitrary"),
            vmem_limit_bytes=vmem_limit),
    )
    out = fn(xt, mk, cmk, mv, cmv, mr, cmr,
             wk, bk, wv, bv, wr, br, wo, bo, w_neg, u)
    return jnp.transpose(out[:U, :B, :size], (1, 0, 2)).astype(x.dtype)


def reference_forward(x, params, *, matmul_dtype=jnp.bfloat16):
    """Pure-JAX reference. Matmuls use the same bf16-operand / f32-accumulate
    precision as the kernel's MXU path for an apples-to-apples comparison."""
    B, U, size = x.shape
    att = params["time_decay"].shape[-1]
    mk = params["time_mix_key"].reshape(1, 1, size)
    mv = params["time_mix_value"].reshape(1, 1, size)
    mr = params["time_mix_receptance"].reshape(1, 1, size)

    def mm(a, w):
        return jnp.dot(a.astype(matmul_dtype), w.astype(matmul_dtype),
                       preferred_element_type=jnp.float32)

    shifted = jnp.concatenate([jnp.zeros_like(x[:, :1]), x[:, :-1]], axis=1)
    xk = x * mk + shifted * (1.0 - mk)
    xv = x * mv + shifted * (1.0 - mv)
    xr = x * mr + shifted * (1.0 - mr)

    k = mm(xk, params["w_key"]) + params["b_key"]
    v = mm(xv, params["w_value"]) + params["b_value"]
    r = jax.nn.sigmoid(mm(xr, params["w_receptance"]) + params["b_receptance"])

    w = -jnp.exp(params["time_decay"])
    u = params["time_first"]

    def step(carry, kv):
        aa, bb, pp = carry
        kk, vv = kv
        ww = u + kk
        qq = jnp.maximum(pp, ww)
        e1 = jnp.exp(pp - qq)
        e2 = jnp.exp(ww - qq)
        out = (e1 * aa + e2 * vv) / (e1 * bb + e2)
        ww2 = pp + w
        qq2 = jnp.maximum(ww2, kk)
        e1b = jnp.exp(ww2 - qq2)
        e2b = jnp.exp(kk - qq2)
        return (e1b * aa + e2b * vv, e1b * bb + e2b, qq2), out

    init = (jnp.zeros((B, att)), jnp.zeros((B, att)), jnp.full((B, att), -1e38))
    _, wkv_t = lax.scan(step, init,
                        (jnp.swapaxes(k, 0, 1), jnp.swapaxes(v, 0, 1)))
    wkv = jnp.swapaxes(wkv_t, 0, 1)
    return mm(r * wkv, params["w_output"]) + params["b_output"]


def make_params(size, att, block_id, num_blocks, key):
    """Deterministic parameter init mirroring SelfAttention.reset_parameters."""
    ratio_0_to_1 = block_id / (num_blocks - 1)
    ratio_1_to_almost0 = 1.0 - block_id / num_blocks

    i = jnp.arange(size, dtype=jnp.float32) / size
    time_mix_key = i ** ratio_1_to_almost0
    time_mix_value = i ** ratio_1_to_almost0 + 0.3 * ratio_0_to_1
    time_mix_receptance = i ** (0.5 * ratio_1_to_almost0)

    h = jnp.arange(att, dtype=jnp.float32)
    time_decay = -5.0 + 8.0 * (h / (att - 1)) ** (0.7 + 1.3 * ratio_0_to_1)
    time_first = jnp.ones((att,), jnp.float32)  # torch.ones_like(...) in ref code

    ks = jax.random.split(key, 8)
    sc_in = 1.0 / jnp.sqrt(size)
    sc_att = 1.0 / jnp.sqrt(att)
    return {
        "time_mix_key": time_mix_key,
        "time_mix_value": time_mix_value,
        "time_mix_receptance": time_mix_receptance,
        "time_decay": time_decay,
        "time_first": time_first,
        # Linear weights stored pre-transposed: y = x @ W + b
        "w_key": jax.random.normal(ks[0], (size, att), jnp.float32) * sc_in,
        "b_key": jax.random.normal(ks[1], (att,), jnp.float32) * 0.02,
        "w_value": jax.random.normal(ks[2], (size, att), jnp.float32) * sc_in,
        "b_value": jax.random.normal(ks[3], (att,), jnp.float32) * 0.02,
        "w_receptance": jax.random.normal(ks[4], (size, att), jnp.float32) * sc_in,
        "b_receptance": jax.random.normal(ks[5], (att,), jnp.float32) * 0.02,
        "w_output": jax.random.normal(ks[6], (att, size), jnp.float32) * sc_att,
        "b_output": jax.random.normal(ks[7], (size,), jnp.float32) * 0.02,
    }


if __name__ == "__main__":
    # Small demo shapes; size/att are padded to 128 in the wrapper.
    B, U, size, att = 2, 16, 32, 48
    block_id, num_blocks = 1, 4

    key = jax.random.PRNGKey(0)
    kx, kp = jax.random.split(key)
    x = jax.random.normal(kx, (B, U, size), jnp.float32)
    params = make_params(size, att, block_id, num_blocks, kp)

    # Reference consumes the same bf16-rounded activations the kernel streams.
    x_q = x.astype(jnp.bfloat16).astype(jnp.float32)
    ref = jax.block_until_ready(reference_forward(x_q, params))

    # (a) tu=8 -> two time chunks per batch tile: exercises the cross-chunk
    #     time-shift / WKV-state carry.  (b) default tu: auto (device-tuned).
    out_a = jax.block_until_ready(encoder_self_attention(x, params, bt=8, tu=8))
    out_b = jax.block_until_ready(encoder_self_attention(x, params))

    for out in (out_a, out_b):
        assert out.shape == (B, U, size)
        max_err = jnp.max(jnp.abs(out - ref))
        # bf16 activation/output streaming + approx reciprocal => ~1e-2 scale.
        assert jnp.allclose(out, ref, atol=2e-2, rtol=2e-2), (
            f"max abs err = {max_err}")

    print("KERNEL_OK")
</pallas_src>

<mosaic_0001>
module attributes {stable_mosaic.version = 11 : i64} {
  func.func @_rwkv_attn_kernel(%arg0: i32, %arg1: i32, %arg2: memref<8x8x128xbf16, #tpu.memory_space<vmem>>, %arg3: memref<1x128xf32, #tpu.memory_space<vmem>>, %arg4: memref<1x128xf32, #tpu.memory_space<vmem>>, %arg5: memref<1x128xf32, #tpu.memory_space<vmem>>, %arg6: memref<1x128xf32, #tpu.memory_space<vmem>>, %arg7: memref<1x128xf32, #tpu.memory_space<vmem>>, %arg8: memref<1x128xf32, #tpu.memory_space<vmem>>, %arg9: memref<128x128xbf16, #tpu.memory_space<vmem>>, %arg10: memref<1x128xf32, #tpu.memory_space<vmem>>, %arg11: memref<128x128xbf16, #tpu.memory_space<vmem>>, %arg12: memref<1x128xf32, #tpu.memory_space<vmem>>, %arg13: memref<128x128xbf16, #tpu.memory_space<vmem>>, %arg14: memref<1x128xf32, #tpu.memory_space<vmem>>, %arg15: memref<128x128xbf16, #tpu.memory_space<vmem>>, %arg16: memref<1x128xf32, #tpu.memory_space<vmem>>, %arg17: memref<1x128xf32, #tpu.memory_space<vmem>>, %arg18: memref<1x128xf32, #tpu.memory_space<vmem>>, %arg19: memref<8x8x128xbf16, #tpu.memory_space<vmem>>, %arg20: memref<64x128xf32, #tpu.memory_space<vmem>>, %arg21: memref<64x128xf32, #tpu.memory_space<vmem>>, %arg22: memref<64x128xf32, #tpu.memory_space<vmem>>, %arg23: memref<64x128xbf16, #tpu.memory_space<vmem>>, %arg24: memref<8x128xf32, #tpu.memory_space<vmem>>, %arg25: memref<8x128xf32, #tpu.memory_space<vmem>>, %arg26: memref<8x128xf32, #tpu.memory_space<vmem>>, %arg27: memref<8x128xf32, #tpu.memory_space<vmem>>) attributes {dimension_semantics = [#tpu.dimension_semantics<parallel>, #tpu.dimension_semantics<arbitrary>], iteration_bounds = array<i64: 1, 2>, scalar_prefetch = 0 : i64, scratch_operands = 8 : i64, tpu.core_type = #tpu.core_type<tc>, window_params = [{transform_indices = @transform_0, window_bounds = array<i64: 8, 8, 128>}, {pipeline_mode = #tpu.pipeline_mode<synchronous>, transform_indices = @transform_1, window_bounds = array<i64: 1, 128>}, {pipeline_mode = #tpu.pipeline_mode<synchronous>, transform_indices = @transform_2, window_bounds = array<i64: 1, 128>}, {pipeline_mode = #tpu.pipeline_mode<synchronous>, transform_indices = @transform_3, window_bounds = array<i64: 1, 128>}, {pipeline_mode = #tpu.pipeline_mode<synchronous>, transform_indices = @transform_4, window_bounds = array<i64: 1, 128>}, {pipeline_mode = #tpu.pipeline_mode<synchronous>, transform_indices = @transform_5, window_bounds = array<i64: 1, 128>}, {pipeline_mode = #tpu.pipeline_mode<synchronous>, transform_indices = @transform_6, window_bounds = array<i64: 1, 128>}, {pipeline_mode = #tpu.pipeline_mode<synchronous>, transform_indices = @transform_7, window_bounds = array<i64: 128, 128>}, {pipeline_mode = #tpu.pipeline_mode<synchronous>, transform_indices = @transform_8, window_bounds = array<i64: 1, 128>}, {pipeline_mode = #tpu.pipeline_mode<synchronous>, transform_indices = @transform_9, window_bounds = array<i64: 128, 128>}, {pipeline_mode = #tpu.pipeline_mode<synchronous>, transform_indices = @transform_10, window_bounds = array<i64: 1, 128>}, {pipeline_mode = #tpu.pipeline_mode<synchronous>, transform_indices = @transform_11, window_bounds = array<i64: 128, 128>}, {pipeline_mode = #tpu.pipeline_mode<synchronous>, transform_indices = @transform_12, window_bounds = array<i64: 1, 128>}, {pipeline_mode = #tpu.pipeline_mode<synchronous>, transform_indices = @transform_13, window_bounds = array<i64: 128, 128>}, {pipeline_mode = #tpu.pipeline_mode<synchronous>, transform_indices = @transform_14, window_bounds = array<i64: 1, 128>}, {pipeline_mode = #tpu.pipeline_mode<synchronous>, transform_indices = @transform_15, window_bounds = array<i64: 1, 128>}, {pipeline_mode = #tpu.pipeline_mode<synchronous>, transform_indices = @transform_16, window_bounds = array<i64: 1, 128>}, {transform_indices = @transform_17, window_bounds = array<i64: 8, 8, 128>}]} {
    %c0_i32 = arith.constant 0 : i32
    %0 = arith.cmpi eq, %arg1, %c0_i32 : i32
    %1 = arith.extui %0 : i1 to i32
    %c0_i32_0 = arith.constant 0 : i32
    %2 = arith.cmpi ne, %1, %c0_i32_0 : i32
    scf.if %2 {
      %cst_101 = arith.constant 0.000000e+00 : f32
      %350 = vector.broadcast %cst_101 : f32 to vector<8x128xf32>
      %c0_102 = arith.constant 0 : index
      %c0_103 = arith.constant 0 : index
      %351 = vector.load %arg27[%c0_102, %c0_103] : memref<8x128xf32, #tpu.memory_space<vmem>>, vector<8x128xf32>
      tpu.vector_store %arg27[%c0_102, %c0_103], %350 {strides = array<i32>} : memref<8x128xf32, #tpu.memory_space<vmem>>, vector<8x128xf32>,
      %cst_104 = arith.constant 0.000000e+00 : f32
      %352 = vector.broadcast %cst_104 : f32 to vector<8x128xf32>
      %c0_105 = arith.constant 0 : index
      %c0_106 = arith.constant 0 : index
      %353 = vector.load %arg24[%c0_105, %c0_106] : memref<8x128xf32, #tpu.memory_space<vmem>>, vector<8x128xf32>
      tpu.vector_store %arg24[%c0_105, %c0_106], %352 {strides = array<i32>} : memref<8x128xf32, #tpu.memory_space<vmem>>, vector<8x128xf32>,
      %cst_107 = arith.constant 0.000000e+00 : f32
      %354 = vector.broadcast %cst_107 : f32 to vector<8x128xf32>
      %c0_108 = arith.constant 0 : index
      %c0_109 = arith.constant 0 : index
      %355 = vector.load %arg25[%c0_108, %c0_109] : memref<8x128xf32, #tpu.memory_space<vmem>>, vector<8x128xf32>
      tpu.vector_store %arg25[%c0_108, %c0_109], %354 {strides = array<i32>} : memref<8x128xf32, #tpu.memory_space<vmem>>, vector<8x128xf32>,
      %cst_110 = arith.constant -9.99999968E+37 : f32
      %356 = vector.broadcast %cst_110 : f32 to vector<8x128xf32>
      %c0_111 = arith.constant 0 : index
      %c0_112 = arith.constant 0 : index
      %357 = vector.load %arg26[%c0_111, %c0_112] : memref<8x128xf32, #tpu.memory_space<vmem>>, vector<8x128xf32>
      tpu.vector_store %arg26[%c0_111, %c0_112], %356 {strides = array<i32>} : memref<8x128xf32, #tpu.memory_space<vmem>>, vector<8x128xf32>,
    } else {
    }
    %c0 = arith.constant 0 : index
    %c0_1 = arith.constant 0 : index
    %c0_2 = arith.constant 0 : index
    %3 = vector.load %arg2[%c0, %c0_1, %c0_2] : memref<8x8x128xbf16, #tpu.memory_space<vmem>>, vector<8x8x128xbf16>
    %4 = arith.extf %3 : vector<8x8x128xbf16> to vector<8x8x128xf32>
    %5 = vector.shape_cast %4 : vector<8x8x128xf32> to vector<64x128xf32>
    %c0_3 = arith.constant 0 : index
    %c0_4 = arith.constant 0 : index
    %6 = vector.load %arg27[%c0_3, %c0_4] : memref<8x128xf32, #tpu.memory_space<vmem>>, vector<8x128xf32>
    %7 = vector.extract_strided_slice %5 {offsets = [0, 0], sizes = [56, 128], strides = [1, 1]} : vector<64x128xf32> to vector<56x128xf32>
    %8 = tpu.concatenate %6, %7 in 0 : vector<8x128xf32>, vector<56x128xf32> -> vector<64x128xf32>
    %9 = vector.extract_strided_slice %5 {offsets = [56, 0], sizes = [8, 128], strides = [1, 1]} : vector<64x128xf32> to vector<8x128xf32>
    %c0_5 = arith.constant 0 : index
    %c0_6 = arith.constant 0 : index
    %10 = vector.load %arg27[%c0_5, %c0_6] : memref<8x128xf32, #tpu.memory_space<vmem>>, vector<8x128xf32>
    tpu.vector_store %arg27[%c0_5, %c0_6], %9 {strides = array<i32>} : memref<8x128xf32, #tpu.memory_space<vmem>>, vector<8x128xf32>,
    %c0_7 = arith.constant 0 : index
    %c0_8 = arith.constant 0 : index
    %11 = vector.load %arg3[%c0_7, %c0_8] : memref<1x128xf32, #tpu.memory_space<vmem>>, vector<1x128xf32>
    %12 = vector.broadcast %11 : vector<1x128xf32> to vector<64x128xf32>
    %13 = arith.mulf %5, %12 : vector<64x128xf32>
    %c0_9 = arith.constant 0 : index
    %c0_10 = arith.constant 0 : index
    %14 = vector.load %arg4[%c0_9, %c0_10] : memref<1x128xf32, #tpu.memory_space<vmem>>, vector<1x128xf32>
    %15 = vector.broadcast %14 : vector<1x128xf32> to vector<64x128xf32>
    %16 = arith.mulf %8, %15 : vector<64x128xf32>
    %17 = arith.addf %13, %16 : vector<64x128xf32>
    %18 = arith.truncf %17 : vector<64x128xf32> to vector<64x128xbf16>
    %c0_11 = arith.constant 0 : index
    %c0_12 = arith.constant 0 : index
    %19 = vector.load %arg5[%c0_11, %c0_12] : memref<1x128xf32, #tpu.memory_space<vmem>>, vector<1x128xf32>
    %20 = vector.broadcast %19 : vector<1x128xf32> to vector<64x128xf32>
    %21 = arith.mulf %5, %20 : vector<64x128xf32>
    %c0_13 = arith.constant 0 : index
    %c0_14 = arith.constant 0 : index
    %22 = vector.load %arg6[%c0_13, %c0_14] : memref<1x128xf32, #tpu.memory_space<vmem>>, vector<1x128xf32>
    %23 = vector.broadcast %22 : vector<1x128xf32> to vector<64x128xf32>
    %24 = arith.mulf %8, %23 : vector<64x128xf32>
    %25 = arith.addf %21, %24 : vector<64x128xf32>
    %26 = arith.truncf %25 : vector<64x128xf32> to vector<64x128xbf16>
    %c0_15 = arith.constant 0 : index
    %c0_16 = arith.constant 0 : index
    %27 = vector.load %arg7[%c0_15, %c0_16] : memref<1x128xf32, #tpu.memory_space<vmem>>, vector<1x128xf32>
    %28 = vector.broadcast %27 : vector<1x128xf32> to vector<64x128xf32>
    %29 = arith.mulf %5, %28 : vector<64x128xf32>
    %c0_17 = arith.constant 0 : index
    %c0_18 = arith.constant 0 : index
    %30 = vector.load %arg8[%c0_17, %c0_18] : memref<1x128xf32, #tpu.memory_space<vmem>>, vector<1x128xf32>
    %31 = vector.broadcast %30 : vector<1x128xf32> to vector<64x128xf32>
    %32 = arith.mulf %8, %31 : vector<64x128xf32>
    %33 = arith.addf %29, %32 : vector<64x128xf32>
    %34 = arith.truncf %33 : vector<64x128xf32> to vector<64x128xbf16>
    %c0_19 = arith.constant 0 : index
    %c0_20 = arith.constant 0 : index
    %35 = vector.load %arg23[%c0_19, %c0_20] : memref<64x128xbf16, #tpu.memory_space<vmem>>, vector<64x128xbf16>
    tpu.vector_store %arg23[%c0_19, %c0_20], %34 {strides = array<i32>} : memref<64x128xbf16, #tpu.memory_space<vmem>>, vector<64x128xbf16>,
    %c0_21 = arith.constant 0 : index
    %c0_22 = arith.constant 0 : index
    %36 = vector.load %arg9[%c0_21, %c0_22] : memref<128x128xbf16, #tpu.memory_space<vmem>>, vector<128x128xbf16>
    %cst = arith.constant dense<0.000000e+00> : vector<64x128xf32>
    %37 = tpu.matmul %18, %36, %cst {dimension_numbers = #tpu.dot_dimension_numbers<[1], [0], [0], [1], [0, 0, 1, 1], [], []>} : vector<64x128xbf16>, vector<128x128xbf16>, vector<64x128xf32> -> vector<64x128xf32>
    %c0_23 = arith.constant 0 : index
    %c0_24 = arith.constant 0 : index
    %38 = vector.load %arg10[%c0_23, %c0_24] : memref<1x128xf32, #tpu.memory_space<vmem>>, vector<1x128xf32>
    %39 = vector.broadcast %38 : vector<1x128xf32> to vector<64x128xf32>
    %40 = arith.addf %37, %39 : vector<64x128xf32>
    %c0_25 = arith.constant 0 : index
    %c0_26 = arith.constant 0 : index
    %41 = vector.load %arg20[%c0_25, %c0_26] : memref<64x128xf32, #tpu.memory_space<vmem>>, vector<64x128xf32>
    tpu.vector_store %arg20[%c0_25, %c0_26], %40 {strides = array<i32>} : memref<64x128xf32, #tpu.memory_space<vmem>>, vector<64x128xf32>,
    %c0_27 = arith.constant 0 : index
    %c0_28 = arith.constant 0 : index
    %42 = vector.load %arg11[%c0_27, %c0_28] : memref<128x128xbf16, #tpu.memory_space<vmem>>, vector<128x128xbf16>
    %cst_29 = arith.constant dense<0.000000e+00> : vector<64x128xf32>
    %43 = tpu.matmul %26, %42, %cst_29 {dimension_numbers = #tpu.dot_dimension_numbers<[1], [0], [0], [1], [0, 0, 1, 1], [], []>} : vector<64x128xbf16>, vector<128x128xbf16>, vector<64x128xf32> -> vector<64x128xf32>
    %c0_30 = arith.constant 0 : index
    %c0_31 = arith.constant 0 : index
    %44 = vector.load %arg12[%c0_30, %c0_31] : memref<1x128xf32, #tpu.memory_space<vmem>>, vector<1x128xf32>
    %45 = vector.broadcast %44 : vector<1x128xf32> to vector<64x128xf32>
    %46 = arith.addf %43, %45 : vector<64x128xf32>
    %c0_32 = arith.constant 0 : index
    %c0_33 = arith.constant 0 : index
    %47 = vector.load %arg21[%c0_32, %c0_33] : memref<64x128xf32, #tpu.memory_space<vmem>>, vector<64x128xf32>
    tpu.vector_store %arg21[%c0_32, %c0_33], %46 {strides = array<i32>} : memref<64x128xf32, #tpu.memory_space<vmem>>, vector<64x128xf32>,
    %c0_34 = arith.constant 0 : index
    %c0_35 = arith.constant 0 : index
    %48 = vector.load %arg17[%c0_34, %c0_35] : memref<1x128xf32, #tpu.memory_space<vmem>>, vector<1x128xf32>
    %c0_36 = arith.constant 0 : index
    %c0_37 = arith.constant 0 : index
    %49 = vector.load %arg18[%c0_36, %c0_37] : memref<1x128xf32, #tpu.memory_space<vmem>>, vector<1x128xf32>
    %c0_38 = arith.constant 0 : index
    %c0_39 = arith.constant 0 : index
    %50 = vector.load %arg24[%c0_38, %c0_39] : memref<8x128xf32, #tpu.memory_space<vmem>>, vector<8x128xf32>
    %c0_40 = arith.constant 0 : index
    %c0_41 = arith.constant 0 : index
    %51 = vector.load %arg25[%c0_40, %c0_41] : memref<8x128xf32, #tpu.memory_space<vmem>>, vector<8x128xf32>
    %c0_42 = arith.constant 0 : index
    %c0_43 = arith.constant 0 : index
    %52 = vector.load %arg26[%c0_42, %c0_43] : memref<8x128xf32, #tpu.memory_space<vmem>>, vector<8x128xf32>
    %c0_i32_44 = arith.constant 0 : i32
    %c8_i32 = arith.constant 8 : i32
    %53 = arith.muli %c0_i32_44, %c8_i32 : i32
    %54 = tpu.assume_multiple %53, 8 : i32
    %55 = arith.index_cast %54 : i32 to index
    %c0_45 = arith.constant 0 : index
    %56 = vector.load %arg20[%55, %c0_45] : memref<64x128xf32, #tpu.memory_space<vmem>>, vector<8x128xf32>
    %57 = arith.index_cast %54 : i32 to index
    %c0_46 = arith.constant 0 : index
    %58 = vector.load %arg21[%57, %c0_46] : memref<64x128xf32, #tpu.memory_space<vmem>>, vector<8x128xf32>
    %59 = vector.broadcast %49 : vector<1x128xf32> to vector<8x128xf32>
    %60 = arith.addf %59, %56 : vector<8x128xf32>
    %61 = arith.maximumf %52, %60 : vector<8x128xf32>
    %62 = arith.subf %52, %61 : vector<8x128xf32>
    %63 = math.exp %62 : vector<8x128xf32>
    %64 = arith.subf %60, %61 : vector<8x128xf32>
    %65 = math.exp %64 : vector<8x128xf32>
    %66 = arith.mulf %63, %50 : vector<8x128xf32>
    %67 = arith.mulf %65, %58 : vector<8x128xf32>
    %68 = arith.addf %66, %67 : vector<8x128xf32>
    %69 = arith.mulf %63, %51 : vector<8x128xf32>
    %70 = arith.addf %69, %65 : vector<8x128xf32>
    %71 = tpu.reciprocal %70 {approx = true} : vector<8x128xf32> -> vector<8x128xf32>
    %72 = arith.mulf %68, %71 : vector<8x128xf32>
    %73 = arith.index_cast %54 : i32 to index
    %c0_47 = arith.constant 0 : index
    %74 = vector.load %arg22[%73, %c0_47] : memref<64x128xf32, #tpu.memory_space<vmem>>, vector<8x128xf32>
    tpu.vector_store %arg22[%73, %c0_47], %72 {strides = array<i32>} : memref<64x128xf32, #tpu.memory_space<vmem>>, vector<8x128xf32>,
    %75 = vector.broadcast %48 : vector<1x128xf32> to vector<8x128xf32>
    %76 = arith.addf %52, %75 : vector<8x128xf32>
    %77 = arith.maximumf %76, %56 : vector<8x128xf32>
    %78 = arith.subf %76, %77 : vector<8x128xf32>
    %79 = math.exp %78 : vector<8x128xf32>
    %80 = arith.subf %56, %77 : vector<8x128xf32>
    %81 = math.exp %80 : vector<8x128xf32>
    %82 = arith.mulf %79, %50 : vector<8x128xf32>
    %83 = arith.mulf %81, %58 : vector<8x128xf32>
    %84 = arith.addf %82, %83 : vector<8x128xf32>
    %85 = arith.mulf %79, %51 : vector<8x128xf32>
    %86 = arith.addf %85, %81 : vector<8x128xf32>
    %c1_i32 = arith.constant 1 : i32
    %c8_i32_48 = arith.constant 8 : i32
    %87 = arith.muli %c1_i32, %c8_i32_48 : i32
    %88 = tpu.assume_multiple %87, 8 : i32
    %89 = arith.index_cast %88 : i32 to index
    %c0_49 = arith.constant 0 : index
    %90 = vector.load %arg20[%89, %c0_49] : memref<64x128xf32, #tpu.memory_space<vmem>>, vector<8x128xf32>
    %91 = arith.index_cast %88 : i32 to index
    %c0_50 = arith.constant 0 : index
    %92 = vector.load %arg21[%91, %c0_50] : memref<64x128xf32, #tpu.memory_space<vmem>>, vector<8x128xf32>
    %93 = vector.broadcast %49 : vector<1x128xf32> to vector<8x128xf32>
    %94 = arith.addf %93, %90 : vector<8x128xf32>
    %95 = arith.maximumf %77, %94 : vector<8x128xf32>
    %96 = arith.subf %77, %95 : vector<8x128xf32>
    %97 = math.exp %96 : vector<8x128xf32>
    %98 = arith.subf %94, %95 : vector<8x128xf32>
    %99 = math.exp %98 : vector<8x128xf32>
    %100 = arith.mulf %97, %84 : vector<8x128xf32>
    %101 = arith.mulf %99, %92 : vector<8x128xf32>
    %102 = arith.addf %100, %101 : vector<8x128xf32>
    %103 = arith.mulf %97, %86 : vector<8x128xf32>
    %104 = arith.addf %103, %99 : vector<8x128xf32>
    %105 = tpu.reciprocal %104 {approx = true} : vector<8x128xf32> -> vector<8x128xf32>
    %106 = arith.mulf %102, %105 : vector<8x128xf32>
    %107 = arith.index_cast %88 : i32 to index
    %c0_51 = arith.constant 0 : index
    %108 = vector.load %arg22[%107, %c0_51] : memref<64x128xf32, #tpu.memory_space<vmem>>, vector<8x128xf32>
    tpu.vector_store %arg22[%107, %c0_51], %106 {strides = array<i32>} : memref<64x128xf32, #tpu.memory_space<vmem>>, vector<8x128xf32>,
    %109 = vector.broadcast %48 : vector<1x128xf32> to vector<8x128xf32>
    %110 = arith.addf %77, %109 : vector<8x128xf32>
    %111 = arith.maximumf %110, %90 : vector<8x128xf32>
    %112 = arith.subf %110, %111 : vector<8x128xf32>
    %113 = math.exp %112 : vector<8x128xf32>
    %114 = arith.subf %90, %111 : vector<8x128xf32>
    %115 = math.exp %114 : vector<8x128xf32>
    %116 = arith.mulf %113, %84 : vector<8x128xf32>
    %117 = arith.mulf %115, %92 : vector<8x128xf32>
    %118 = arith.addf %116, %117 : vector<8x128xf32>
    %119 = arith.mulf %113, %86 : vector<8x128xf32>
    %120 = arith.addf %119, %115 : vector<8x128xf32>
    %c2_i32 = arith.constant 2 : i32
    %c8_i32_52 = arith.constant 8 : i32
    %121 = arith.muli %c2_i32, %c8_i32_52 : i32
    %122 = tpu.assume_multiple %121, 8 : i32
    %123 = arith.index_cast %122 : i32 to index
    %c0_53 = arith.constant 0 : index
    %124 = vector.load %arg20[%123, %c0_53] : memref<64x128xf32, #tpu.memory_space<vmem>>, vector<8x128xf32>
    %125 = arith.index_cast %122 : i32 to index
    %c0_54 = arith.constant 0 : index
    %126 = vector.load %arg21[%125, %c0_54] : memref<64x128xf32, #tpu.memory_space<vmem>>, vector<8x128xf32>
    %127 = vector.broadcast %49 : vector<1x128xf32> to vector<8x128xf32>
    %128 = arith.addf %127, %124 : vector<8x128xf32>
    %129 = arith.maximumf %111, %128 : vector<8x128xf32>
    %130 = arith.subf %111, %129 : vector<8x128xf32>
    %131 = math.exp %130 : vector<8x128xf32>
    %132 = arith.subf %128, %129 : vector<8x128xf32>
    %133 = math.exp %132 : vector<8x128xf32>
    %134 = arith.mulf %131, %118 : vector<8x128xf32>
    %135 = arith.mulf %133, %126 : vector<8x128xf32>
    %136 = arith.addf %134, %135 : vector<8x128xf32>
    %137 = arith.mulf %131, %120 : vector<8x128xf32>
    %138 = arith.addf %137, %133 : vector<8x128xf32>
    %139 = tpu.reciprocal %138 {approx = true} : vector<8x128xf32> -> vector<8x128xf32>
    %140 = arith.mulf %136, %139 : vector<8x128xf32>
    %141 = arith.index_cast %122 : i32 to index
    %c0_55 = arith.constant 0 : index
    %142 = vector.load %arg22[%141, %c0_55] : memref<64x128xf32, #tpu.memory_space<vmem>>, vector<8x128xf32>
    tpu.vector_store %arg22[%141, %c0_55], %140 {strides = array<i32>} : memref<64x128xf32, #tpu.memory_space<vmem>>, vector<8x128xf32>,
    %143 = vector.broadcast %48 : vector<1x128xf32> to vector<8x128xf32>
    %144 = arith.addf %111, %143 : vector<8x128xf32>
    %145 = arith.maximumf %144, %124 : vector<8x128xf32>
    %146 = arith.subf %144, %145 : vector<8x128xf32>
    %147 = math.exp %146 : vector<8x128xf32>
    %148 = arith.subf %124, %145 : vector<8x128xf32>
    %149 = math.exp %148 : vector<8x128xf32>
    %150 = arith.mulf %147, %118 : vector<8x128xf32>
    %151 = arith.mulf %149, %126 : vector<8x128xf32>
    %152 = arith.addf %150, %151 : vector<8x128xf32>
    %153 = arith.mulf %147, %120 : vector<8x128xf32>
    %154 = arith.addf %153, %149 : vector<8x128xf32>
    %c3_i32 = arith.constant 3 : i32
    %c8_i32_56 = arith.constant 8 : i32
    %155 = arith.muli %c3_i32, %c8_i32_56 : i32
    %156 = tpu.assume_multiple %155, 8 : i32
    %157 = arith.index_cast %156 : i32 to index
    %c0_57 = arith.constant 0 : index
    %158 = vector.load %arg20[%157, %c0_57] : memref<64x128xf32, #tpu.memory_space<vmem>>, vector<8x128xf32>
    %159 = arith.index_cast %156 : i32 to index
    %c0_58 = arith.constant 0 : index
    %160 = vector.load %arg21[%159, %c0_58] : memref<64x128xf32, #tpu.memory_space<vmem>>, vector<8x128xf32>
    %161 = vector.broadcast %49 : vector<1x128xf32> to vector<8x128xf32>
    %162 = arith.addf %161, %158 : vector<8x128xf32>
    %163 = arith.maximumf %145, %162 : vector<8x128xf32>
    %164 = arith.subf %145, %163 : vector<8x128xf32>
    %165 = math.exp %164 : vector<8x128xf32>
    %166 = arith.subf %162, %163 : vector<8x128xf32>
    %167 = math.exp %166 : vector<8x128xf32>
    %168 = arith.mulf %165, %152 : vector<8x128xf32>
    %169 = arith.mulf %167, %160 : vector<8x128xf32>
    %170 = arith.addf %168, %169 : vector<8x128xf32>
    %171 = arith.mulf %165, %154 : vector<8x128xf32>
    %172 = arith.addf %171, %167 : vector<8x128xf32>
    %173 = tpu.reciprocal %172 {approx = true} : vector<8x128xf32> -> vector<8x128xf32>
    %174 = arith.mulf %170, %173 : vector<8x128xf32>
    %175 = arith.index_cast %156 : i32 to index
    %c0_59 = arith.constant 0 : index
    %176 = vector.load %arg22[%175, %c0_59] : memref<64x128xf32, #tpu.memory_space<vmem>>, vector<8x128xf32>
    tpu.vector_store %arg22[%175, %c0_59], %174 {strides = array<i32>} : memref<64x128xf32, #tpu.memory_space<vmem>>, vector<8x128xf32>,
    %177 = vector.broadcast %48 : vector<1x128xf32> to vector<8x128xf32>
    %178 = arith.addf %145, %177 : vector<8x128xf32>
    %179 = arith.maximumf %178, %158 : vector<8x128xf32>
    %180 = arith.subf %178, %179 : vector<8x128xf32>
    %181 = math.exp %180 : vector<8x128xf32>
    %182 = arith.subf %158, %179 : vector<8x128xf32>
    %183 = math.exp %182 : vector<8x128xf32>
    %184 = arith.mulf %181, %152 : vector<8x128xf32>
    %185 = arith.mulf %183, %160 : vector<8x128xf32>
    %186 = arith.addf %184, %185 : vector<8x128xf32>
    %187 = arith.mulf %181, %154 : vector<8x128xf32>
    %188 = arith.addf %187, %183 : vector<8x128xf32>
    %c4_i32 = arith.constant 4 : i32
    %c8_i32_60 = arith.constant 8 : i32
    %189 = arith.muli %c4_i32, %c8_i32_60 : i32
    %190 = tpu.assume_multiple %189, 8 : i32
    %191 = arith.index_cast %190 : i32 to index
    %c0_61 = arith.constant 0 : index
    %192 = vector.load %arg20[%191, %c0_61] : memref<64x128xf32, #tpu.memory_space<vmem>>, vector<8x128xf32>
    %193 = arith.index_cast %190 : i32 to index
    %c0_62 = arith.constant 0 : index
    %194 = vector.load %arg21[%193, %c0_62] : memref<64x128xf32, #tpu.memory_space<vmem>>, vector<8x128xf32>
    %195 = vector.broadcast %49 : vector<1x128xf32> to vector<8x128xf32>
    %196 = arith.addf %195, %192 : vector<8x128xf32>
    %197 = arith.maximumf %179, %196 : vector<8x128xf32>
    %198 = arith.subf %179, %197 : vector<8x128xf32>
    %199 = math.exp %198 : vector<8x128xf32>
    %200 = arith.subf %196, %197 : vector<8x128xf32>
    %201 = math.exp %200 : vector<8x128xf32>
    %202 = arith.mulf %199, %186 : vector<8x128xf32>
    %203 = arith.mulf %201, %194 : vector<8x128xf32>
    %204 = arith.addf %202, %203 : vector<8x128xf32>
    %205 = arith.mulf %199, %188 : vector<8x128xf32>
    %206 = arith.addf %205, %201 : vector<8x128xf32>
    %207 = tpu.reciprocal %206 {approx = true} : vector<8x128xf32> -> vector<8x128xf32>
    %208 = arith.mulf %204, %207 : vector<8x128xf32>
    %209 = arith.index_cast %190 : i32 to index
    %c0_63 = arith.constant 0 : index
    %210 = vector.load %arg22[%209, %c0_63] : memref<64x128xf32, #tpu.memory_space<vmem>>, vector<8x128xf32>
    tpu.vector_store %arg22[%209, %c0_63], %208 {strides = array<i32>} : memref<64x128xf32, #tpu.memory_space<vmem>>, vector<8x128xf32>,
    %211 = vector.broadcast %48 : vector<1x128xf32> to vector<8x128xf32>
    %212 = arith.addf %179, %211 : vector<8x128xf32>
    %213 = arith.maximumf %212, %192 : vector<8x128xf32>
    %214 = arith.subf %212, %213 : vector<8x128xf32>
    %215 = math.exp %214 : vector<8x128xf32>
    %216 = arith.subf %192, %213 : vector<8x128xf32>
    %217 = math.exp %216 : vector<8x128xf32>
    %218 = arith.mulf %215, %186 : vector<8x128xf32>
    %219 = arith.mulf %217, %194 : vector<8x128xf32>
    %220 = arith.addf %218, %219 : vector<8x128xf32>
    %221 = arith.mulf %215, %188 : vector<8x128xf32>
    %222 = arith.addf %221, %217 : vector<8x128xf32>
    %c5_i32 = arith.constant 5 : i32
    %c8_i32_64 = arith.constant 8 : i32
    %223 = arith.muli %c5_i32, %c8_i32_64 : i32
    %224 = tpu.assume_multiple %223, 8 : i32
    %225 = arith.index_cast %224 : i32 to index
    %c0_65 = arith.constant 0 : index
    %226 = vector.load %arg20[%225, %c0_65] : memref<64x128xf32, #tpu.memory_space<vmem>>, vector<8x128xf32>
    %227 = arith.index_cast %224 : i32 to index
    %c0_66 = arith.constant 0 : index
    %228 = vector.load %arg21[%227, %c0_66] : memref<64x128xf32, #tpu.memory_space<vmem>>, vector<8x128xf32>
    %229 = vector.broadcast %49 : vector<1x128xf32> to vector<8x128xf32>
    %230 = arith.addf %229, %226 : vector<8x128xf32>
    %231 = arith.maximumf %213, %230 : vector<8x128xf32>
    %232 = arith.subf %213, %231 : vector<8x128xf32>
    %233 = math.exp %232 : vector<8x128xf32>
    %234 = arith.subf %230, %231 : vector<8x128xf32>
    %235 = math.exp %234 : vector<8x128xf32>
    %236 = arith.mulf %233, %220 : vector<8x128xf32>
    %237 = arith.mulf %235, %228 : vector<8x128xf32>
    %238 = arith.addf %236, %237 : vector<8x128xf32>
    %239 = arith.mulf %233, %222 : vector<8x128xf32>
    %240 = arith.addf %239, %235 : vector<8x128xf32>
    %241 = tpu.reciprocal %240 {approx = true} : vector<8x128xf32> -> vector<8x128xf32>
    %242 = arith.mulf %238, %241 : vector<8x128xf32>
    %243 = arith.index_cast %224 : i32 to index
    %c0_67 = arith.constant 0 : index
    %244 = vector.load %arg22[%243, %c0_67] : memref<64x128xf32, #tpu.memory_space<vmem>>, vector<8x128xf32>
    tpu.vector_store %arg22[%243, %c0_67], %242 {strides = array<i32>} : memref<64x128xf32, #tpu.memory_space<vmem>>, vector<8x128xf32>,
    %245 = vector.broadcast %48 : vector<1x128xf32> to vector<8x128xf32>
    %246 = arith.addf %213, %245 : vector<8x128xf32>
    %247 = arith.maximumf %246, %226 : vector<8x128xf32>
    %248 = arith.subf %246, %247 : vector<8x128xf32>
    %249 = math.exp %248 : vector<8x128xf32>
    %250 = arith.subf %226, %247 : vector<8x128xf32>
    %251 = math.exp %250 : vector<8x128xf32>
    %252 = arith.mulf %249, %220 : vector<8x128xf32>
    %253 = arith.mulf %251, %228 : vector<8x128xf32>
    %254 = arith.addf %252, %253 : vector<8x128xf32>
    %255 = arith.mulf %249, %222 : vector<8x128xf32>
    %256 = arith.addf %255, %251 : vector<8x128xf32>
    %c6_i32 = arith.constant 6 : i32
    %c8_i32_68 = arith.constant 8 : i32
    %257 = arith.muli %c6_i32, %c8_i32_68 : i32
    %258 = tpu.assume_multiple %257, 8 : i32
    %259 = arith.index_cast %258 : i32 to index
    %c0_69 = arith.constant 0 : index
    %260 = vector.load %arg20[%259, %c0_69] : memref<64x128xf32, #tpu.memory_space<vmem>>, vector<8x128xf32>
    %261 = arith.index_cast %258 : i32 to index
    %c0_70 = arith.constant 0 : index
    %262 = vector.load %arg21[%261, %c0_70] : memref<64x128xf32, #tpu.memory_space<vmem>>, vector<8x128xf32>
    %263 = vector.broadcast %49 : vector<1x128xf32> to vector<8x128xf32>
    %264 = arith.addf %263, %260 : vector<8x128xf32>
    %265 = arith.maximumf %247, %264 : vector<8x128xf32>
    %266 = arith.subf %247, %265 : vector<8x128xf32>
    %267 = math.exp %266 : vector<8x128xf32>
    %268 = arith.subf %264, %265 : vector<8x128xf32>
    %269 = math.exp %268 : vector<8x128xf32>
    %270 = arith.mulf %267, %254 : vector<8x128xf32>
    %271 = arith.mulf %269, %262 : vector<8x128xf32>
    %272 = arith.addf %270, %271 : vector<8x128xf32>
    %273 = arith.mulf %267, %256 : vector<8x128xf32>
    %274 = arith.addf %273, %269 : vector<8x128xf32>
    %275 = tpu.reciprocal %274 {approx = true} : vector<8x128xf32> -> vector<8x128xf32>
    %276 = arith.mulf %272, %275 : vector<8x128xf32>
    %277 = arith.index_cast %258 : i32 to index
    %c0_71 = arith.constant 0 : index
    %278 = vector.load %arg22[%277, %c0_71] : memref<64x128xf32, #tpu.memory_space<vmem>>, vector<8x128xf32>
    tpu.vector_store %arg22[%277, %c0_71], %276 {strides = array<i32>} : memref<64x128xf32, #tpu.memory_space<vmem>>, vector<8x128xf32>,
    %279 = vector.broadcast %48 : vector<1x128xf32> to vector<8x128xf32>
    %280 = arith.addf %247, %279 : vector<8x128xf32>
    %281 = arith.maximumf %280, %260 : vector<8x128xf32>
    %282 = arith.subf %280, %281 : vector<8x128xf32>
    %283 = math.exp %282 : vector<8x128xf32>
    %284 = arith.subf %260, %281 : vector<8x128xf32>
    %285 = math.exp %284 : vector<8x128xf32>
    %286 = arith.mulf %283, %254 : vector<8x128xf32>
    %287 = arith.mulf %285, %262 : vector<8x128xf32>
    %288 = arith.addf %286, %287 : vector<8x128xf32>
    %289 = arith.mulf %283, %256 : vector<8x128xf32>
    %290 = arith.addf %289, %285 : vector<8x128xf32>
    %c7_i32 = arith.constant 7 : i32
    %c8_i32_72 = arith.constant 8 : i32
    %291 = arith.muli %c7_i32, %c8_i32_72 : i32
    %292 = tpu.assume_multiple %291, 8 : i32
    %293 = arith.index_cast %292 : i32 to index
    %c0_73 = arith.constant 0 : index
    %294 = vector.load %arg20[%293, %c0_73] : memref<64x128xf32, #tpu.memory_space<vmem>>, vector<8x128xf32>
    %295 = arith.index_cast %292 : i32 to index
    %c0_74 = arith.constant 0 : index
    %296 = vector.load %arg21[%295, %c0_74] : memref<64x128xf32, #tpu.memory_space<vmem>>, vector<8x128xf32>
    %297 = vector.broadcast %49 : vector<1x128xf32> to vector<8x128xf32>
    %298 = arith.addf %297, %294 : vector<8x128xf32>
    %299 = arith.maximumf %281, %298 : vector<8x128xf32>
    %300 = arith.subf %281, %299 : vector<8x128xf32>
    %301 = math.exp %300 : vector<8x128xf32>
    %302 = arith.subf %298, %299 : vector<8x128xf32>
    %303 = math.exp %302 : vector<8x128xf32>
    %304 = arith.mulf %301, %288 : vector<8x128xf32>
    %305 = arith.mulf %303, %296 : vector<8x128xf32>
    %306 = arith.addf %304, %305 : vector<8x128xf32>
    %307 = arith.mulf %301, %290 : vector<8x128xf32>
    %308 = arith.addf %307, %303 : vector<8x128xf32>
    %309 = tpu.reciprocal %308 {approx = true} : vector<8x128xf32> -> vector<8x128xf32>
    %310 = arith.mulf %306, %309 : vector<8x128xf32>
    %311 = arith.index_cast %292 : i32 to index
    %c0_75 = arith.constant 0 : index
    %312 = vector.load %arg22[%311, %c0_75] : memref<64x128xf32, #tpu.memory_space<vmem>>, vector<8x128xf32>
    tpu.vector_store %arg22[%311, %c0_75], %310 {strides = array<i32>} : memref<64x128xf32, #tpu.memory_space<vmem>>, vector<8x128xf32>,
    %313 = vector.broadcast %48 : vector<1x128xf32> to vector<8x128xf32>
    %314 = arith.addf %281, %313 : vector<8x128xf32>
    %315 = arith.maximumf %314, %294 : vector<8x128xf32>
    %316 = arith.subf %314, %315 : vector<8x128xf32>
    %317 = math.exp %316 : vector<8x128xf32>
    %318 = arith.subf %294, %315 : vector<8x128xf32>
    %319 = math.exp %318 : vector<8x128xf32>
    %320 = arith.mulf %317, %288 : vector<8x128xf32>
    %321 = arith.mulf %319, %296 : vector<8x128xf32>
    %322 = arith.addf %320, %321 : vector<8x128xf32>
    %323 = arith.mulf %317, %290 : vector<8x128xf32>
    %324 = arith.addf %323, %319 : vector<8x128xf32>
    %c8_i32_76 = arith.constant 8 : i32
    %c0_77 = arith.constant 0 : index
    %c0_78 = arith.constant 0 : index
    %325 = vector.load %arg24[%c0_77, %c0_78] : memref<8x128xf32, #tpu.memory_space<vmem>>, vector<8x128xf32>
    tpu.vector_store %arg24[%c0_77, %c0_78], %322 {strides = array<i32>} : memref<8x128xf32, #tpu.memory_space<vmem>>, vector<8x128xf32>,
    %c0_79 = arith.constant 0 : index
    %c0_80 = arith.constant 0 : index
    %326 = vector.load %arg25[%c0_79, %c0_80] : memref<8x128xf32, #tpu.memory_space<vmem>>, vector<8x128xf32>
    tpu.vector_store %arg25[%c0_79, %c0_80], %324 {strides = array<i32>} : memref<8x128xf32, #tpu.memory_space<vmem>>, vector<8x128xf32>,
    %c0_81 = arith.constant 0 : index
    %c0_82 = arith.constant 0 : index
    %327 = vector.load %arg26[%c0_81, %c0_82] : memref<8x128xf32, #tpu.memory_space<vmem>>, vector<8x128xf32>
    tpu.vector_store %arg26[%c0_81, %c0_82], %315 {strides = array<i32>} : memref<8x128xf32, #tpu.memory_space<vmem>>, vector<8x128xf32>,
    %c0_83 = arith.constant 0 : index
    %c0_84 = arith.constant 0 : index
    %328 = vector.load %arg23[%c0_83, %c0_84] : memref<64x128xbf16, #tpu.memory_space<vmem>>, vector<64x128xbf16>
    %c0_85 = arith.constant 0 : index
    %c0_86 = arith.constant 0 : index
    %329 = vector.load %arg13[%c0_85, %c0_86] : memref<128x128xbf16, #tpu.memory_space<vmem>>, vector<128x128xbf16>
    %cst_87 = arith.constant dense<0.000000e+00> : vector<64x128xf32>
    %330 = tpu.matmul %328, %329, %cst_87 {dimension_numbers = #tpu.dot_dimension_numbers<[1], [0], [0], [1], [0, 0, 1, 1], [], []>} : vector<64x128xbf16>, vector<128x128xbf16>, vector<64x128xf32> -> vector<64x128xf32>
    %c0_88 = arith.constant 0 : index
    %c0_89 = arith.constant 0 : index
    %331 = vector.load %arg14[%c0_88, %c0_89] : memref<1x128xf32, #tpu.memory_space<vmem>>, vector<1x128xf32>
    %332 = vector.broadcast %331 : vector<1x128xf32> to vector<64x128xf32>
    %333 = arith.addf %330, %332 : vector<64x128xf32>
    %334 = arith.negf %333 : vector<64x128xf32>
    %335 = math.exp %334 : vector<64x128xf32>
    %cst_90 = arith.constant 1.000000e+00 : f32
    %336 = vector.broadcast %cst_90 : f32 to vector<64x128xf32>
    %337 = arith.addf %336, %335 : vector<64x128xf32>
    %338 = arith.divf %336, %337 : vector<64x128xf32>
    %c0_91 = arith.constant 0 : index
    %c0_92 = arith.constant 0 : index
    %339 = vector.load %arg22[%c0_91, %c0_92] : memref<64x128xf32, #tpu.memory_space<vmem>>, vector<64x128xf32>
    %340 = arith.mulf %338, %339 : vector<64x128xf32>
    %341 = arith.truncf %340 : vector<64x128xf32> to vector<64x128xbf16>
    %c0_93 = arith.constant 0 : index
    %c0_94 = arith.constant 0 : index
    %342 = vector.load %arg15[%c0_93, %c0_94] : memref<128x128xbf16, #tpu.memory_space<vmem>>, vector<128x128xbf16>
    %cst_95 = arith.constant dense<0.000000e+00> : vector<64x128xf32>
    %343 = tpu.matmul %341, %342, %cst_95 {dimension_numbers = #tpu.dot_dimension_numbers<[1], [0], [0], [1], [0, 0, 1, 1], [], []>} : vector<64x128xbf16>, vector<128x128xbf16>, vector<64x128xf32> -> vector<64x128xf32>
    %c0_96 = arith.constant 0 : index
    %c0_97 = arith.constant 0 : index
    %344 = vector.load %arg16[%c0_96, %c0_97] : memref<1x128xf32, #tpu.memory_space<vmem>>, vector<1x128xf32>
    %345 = vector.broadcast %344 : vector<1x128xf32> to vector<64x128xf32>
    %346 = arith.addf %343, %345 : vector<64x128xf32>
    %347 = vector.shape_cast %346 : vector<64x128xf32> to vector<8x8x128xf32>
    %348 = arith.truncf %347 : vector<8x8x128xf32> to vector<8x8x128xbf16>
    %c0_98 = arith.constant 0 : index
    %c0_99 = arith.constant 0 : index
    %c0_100 = arith.constant 0 : index
    %349 = vector.load %arg19[%c0_98, %c0_99, %c0_100] : memref<8x8x128xbf16, #tpu.memory_space<vmem>>, vector<8x8x128xbf16>
    tpu.vector_store %arg19[%c0_98, %c0_99, %c0_100], %348 {strides = array<i32>} : memref<8x8x128xbf16, #tpu.memory_space<vmem>>, vector<8x8x128xbf16>,
    return
  }
  func.func @transform_0(%arg0: i32, %arg1: i32) -> (i32, i32, i32) {
    %c0_i32 = arith.constant 0 : i32
    %c0_i32_0 = arith.constant 0 : i32
    return %arg1, %arg0, %c0_i32 : i32, i32, i32
  }
  func.func @transform_1(%arg0: i32, %arg1: i32) -> (i32, i32) {
    %c0_i32 = arith.constant 0 : i32
    %c0_i32_0 = arith.constant 0 : i32
    %c0_i32_1 = arith.constant 0 : i32
    return %c0_i32, %c0_i32_0 : i32, i32
  }
  func.func @transform_2(%arg0: i32, %arg1: i32) -> (i32, i32) {
    %c0_i32 = arith.constant 0 : i32
    %c0_i32_0 = arith.constant 0 : i32
    %c0_i32_1 = arith.constant 0 : i32
    return %c0_i32, %c0_i32_0 : i32, i32
  }
  func.func @transform_3(%arg0: i32, %arg1: i32) -> (i32, i32) {
    %c0_i32 = arith.constant 0 : i32
    %c0_i32_0 = arith.constant 0 : i32
    %c0_i32_1 = arith.constant 0 : i32
    return %c0_i32, %c0_i32_0 : i32, i32
  }
  func.func @transform_4(%arg0: i32, %arg1: i32) -> (i32, i32) {
    %c0_i32 = arith.constant 0 : i32
    %c0_i32_0 = arith.constant 0 : i32
    %c0_i32_1 = arith.constant 0 : i32
    return %c0_i32, %c0_i32_0 : i32, i32
  }
  func.func @transform_5(%arg0: i32, %arg1: i32) -> (i32, i32) {
    %c0_i32 = arith.constant 0 : i32
    %c0_i32_0 = arith.constant 0 : i32
    %c0_i32_1 = arith.constant 0 : i32
    return %c0_i32, %c0_i32_0 : i32, i32
  }
  func.func @transform_6(%arg0: i32, %arg1: i32) -> (i32, i32) {
    %c0_i32 = arith.constant 0 : i32
    %c0_i32_0 = arith.constant 0 : i32
    %c0_i32_1 = arith.constant 0 : i32
    return %c0_i32, %c0_i32_0 : i32, i32
  }
  func.func @transform_7(%arg0: i32, %arg1: i32) -> (i32, i32) {
    %c0_i32 = arith.constant 0 : i32
    %c0_i32_0 = arith.constant 0 : i32
    %c0_i32_1 = arith.constant 0 : i32
    return %c0_i32, %c0_i32_0 : i32, i32
  }
  func.func @transform_8(%arg0: i32, %arg1: i32) -> (i32, i32) {
    %c0_i32 = arith.constant 0 : i32
    %c0_i32_0 = arith.constant 0 : i32
    %c0_i32_1 = arith.constant 0 : i32
    return %c0_i32, %c0_i32_0 : i32, i32
  }
  func.func @transform_9(%arg0: i32, %arg1: i32) -> (i32, i32) {
    %c0_i32 = arith.constant 0 : i32
    %c0_i32_0 = arith.constant 0 : i32
    %c0_i32_1 = arith.constant 0 : i32
    return %c0_i32, %c0_i32_0 : i32, i32
  }
  func.func @transform_10(%arg0: i32, %arg1: i32) -> (i32, i32) {
    %c0_i32 = arith.constant 0 : i32
    %c0_i32_0 = arith.constant 0 : i32
    %c0_i32_1 = arith.constant 0 : i32
    return %c0_i32, %c0_i32_0 : i32, i32
  }
  func.func @transform_11(%arg0: i32, %arg1: i32) -> (i32, i32) {
    %c0_i32 = arith.constant 0 : i32
    %c0_i32_0 = arith.constant 0 : i32
    %c0_i32_1 = arith.constant 0 : i32
    return %c0_i32, %c0_i32_0 : i32, i32
  }
  func.func @transform_12(%arg0: i32, %arg1: i32) -> (i32, i32) {
    %c0_i32 = arith.constant 0 : i32
    %c0_i32_0 = arith.constant 0 : i32
    %c0_i32_1 = arith.constant 0 : i32
    return %c0_i32, %c0_i32_0 : i32, i32
  }
  func.func @transform_13(%arg0: i32, %arg1: i32) -> (i32, i32) {
    %c0_i32 = arith.constant 0 : i32
    %c0_i32_0 = arith.constant 0 : i32
    %c0_i32_1 = arith.constant 0 : i32
    return %c0_i32, %c0_i32_0 : i32, i32
  }
  func.func @transform_14(%arg0: i32, %arg1: i32) -> (i32, i32) {
    %c0_i32 = arith.constant 0 : i32
    %c0_i32_0 = arith.constant 0 : i32
    %c0_i32_1 = arith.constant 0 : i32
    return %c0_i32, %c0_i32_0 : i32, i32
  }
  func.func @transform_15(%arg0: i32, %arg1: i32) -> (i32, i32) {
    %c0_i32 = arith.constant 0 : i32
    %c0_i32_0 = arith.constant 0 : i32
    %c0_i32_1 = arith.constant 0 : i32
    return %c0_i32, %c0_i32_0 : i32, i32
  }
  func.func @transform_16(%arg0: i32, %arg1: i32) -> (i32, i32) {
    %c0_i32 = arith.constant 0 : i32
    %c0_i32_0 = arith.constant 0 : i32
    %c0_i32_1 = arith.constant 0 : i32
    return %c0_i32, %c0_i32_0 : i32, i32
  }
  func.func @transform_17(%arg0: i32, %arg1: i32) -> (i32, i32, i32) {
    %c0_i32 = arith.constant 0 : i32
    %c0_i32_0 = arith.constant 0 : i32
    return %arg1, %arg0, %c0_i32 : i32, i32, i32
  }
}

</mosaic_0001>

<bundles_post_ra>
// kernel: tpu_custom_call.1
= control target key start
LH: loop header
LB: loop body
LE: loop exit
PB: predicated region body
PF: predicated region fallthrough
CT: control target
= control target key end

     0   :  { %s3501_s0 = inlined_call_operand.hbm [shape: bf16[16,8,128], index: 0, kind: input, shape index: {}]   ;;  %s3502_s1 = inlined_call_operand.vmem [shape: f32[1,128], index: 1, kind: input, shape index: {}]   ;;  %s3503_s2 = inlined_call_operand.vmem [shape: f32[1,128], index: 2, kind: input, shape index: {}]   ;;  %s3504_s3 = inlined_call_operand.vmem [shape: f32[1,128], index: 3, kind: input, shape index: {}]   ;;  %s3505_s4 = inlined_call_operand.vmem [shape: f32[1,128], index: 4, kind: input, shape index: {}]   ;;  %s3506_s5 = inlined_call_operand.vmem [shape: f32[1,128], index: 5, kind: input, shape index: {}]   ;;  %s3507_s6 = inlined_call_operand.vmem [shape: f32[1,128], index: 6, kind: input, shape index: {}]   ;;  %s3508_s7 = inlined_call_operand.hbm [shape: bf16[128,128], index: 7, kind: input, shape index: {}]   ;;  %s3509_s8 = inlined_call_operand.vmem [shape: f32[1,128], index: 8, kind: input, shape index: {}]   ;;  %s3510_s9 = inlined_call_operand.hbm [shape: bf16[128,128], index: 9, kind: input, shape index: {}]   ;;  %s3511_s10 = inlined_call_operand.vmem [shape: f32[1,128], index: 10, kind: input, shape index: {}]   ;;  %s3512_s11 = inlined_call_operand.hbm [shape: bf16[128,128], index: 11, kind: input, shape index: {}]   ;;  %s3513_s12 = inlined_call_operand.vmem [shape: f32[1,128], index: 12, kind: input, shape index: {}]   ;;  %s3514_s13 = inlined_call_operand.hbm [shape: bf16[128,128], index: 13, kind: input, shape index: {}]   ;;  %s3515_s14 = inlined_call_operand.vmem [shape: f32[1,128], index: 14, kind: input, shape index: {}]   ;;  %s3516_s15 = inlined_call_operand.vmem [shape: f32[1,128], index: 15, kind: input, shape index: {}]   ;;  %s3517_s16 = inlined_call_operand.vmem [shape: f32[1,128], index: 16, kind: input, shape index: {}]   ;;  %s3518_s17 = inlined_call_operand.hbm [shape: bf16[16,8,128], index: 17, kind: output, shape index: {}]  }
   0x1   :  { %3525 = sst [smem:[#allocation27_spill]] %s3501_s0 }
   0x2   :  { %3526 = sst [smem:[#allocation28_spill]] %s3502_s1 }
   0x3   :  { %3527 = sst [smem:[#allocation29_spill]] %s3508_s7 }
   0x4   :  { %3528 = sst [smem:[#allocation30_spill]] %s3510_s9 }
   0x5   :  { %3529 = sst [smem:[#allocation31_spill]] %s3511_s10 }
   0x6   :  { %3530 = sst [smem:[#allocation32_spill]] %s3512_s11 }
   0x7   :  { %3531 = sst [smem:[#allocation33_spill]] %s3513_s12 }
   0x8   :  { %3532 = sst [smem:[#allocation34_spill]] %s3514_s13 }
   0x9   :  { %3533 = sst [smem:[#allocation35_spill]] %s3515_s14 }
   0xa   :  { %3534 = sst [smem:[#allocation36_spill]] %s3517_s16 }
   0xb   :  { %3535 = sst [smem:[#allocation37_spill]] %s3518_s17 }
   0xc   :  { %22 = vsyncpa [#allocation11], 0 }
   0xd   :  { %24 = vsyncpa [#allocation11 + $0x1], 0 }
   0xe   :  { %25 = vsyncpa [#allocation14], 0 }
   0xf   :  { %26 = vsyncpa [#allocation17], 0 }
  0x10   :  { %27 = vsyncpa [#allocation12], 0 }
  0x11   :  { %29 = vsyncpa [#allocation12 + $0x1], 0  ;;  %s2824_s24 = smov 0   ;;  %s2826_s25 = smov 0  }
  0x12   :  { %s2828_s26 = smov 0   ;;  %s2830_s27 = smov 0  }
  0x13   :  { %s2832_s28 = smov 0   ;;  %s2834_s29 = smov 0  }
  0x14 LB: > { %3536 = sst [smem:[#allocation24_spill]] %s2700_s24  ;;  %s1936_s0 = sadd.s32 4294967295, %s2720_s29   ;;  %s2720_s29 = sphi %s2834_s29, %s35_s29   ;;  %s2716_s28 = sphi %s2832_s28, %s3569_s28   ;;  %s2712_s27 = sphi %s2830_s27, %s3568_s27   ;;  %s2708_s26 = sphi %s2828_s26, %s3567_s26   ;;  %s2704_s25 = sphi %s2826_s25, %s3566_s25   ;;  %s2700_s24 = sphi %s2824_s24, %s3565_s24  }
  0x15   : > { %s1937_s30 = sadd.s32 4294967294, %s2720_s29   ;;  %p69_p0 = scmp.ne.s32.totalorder %s2704_s25, %s2700_s24 }
  0x16   : > { %p2858_p1 = scmp.eq.s32.totalorder %s1936_s0, 0  ;;  %p2862_p2 = scmp.eq.s32.totalorder %s1936_s0, 1 }
  0x17   : > { %p437_p3 = scmp.eq.s32.totalorder %s1937_s30, 1  ;;  %p1938_p5 = scmp.ge.s32.totalorder %s2720_s29, 1 }
  0x18   : > { %p2868_p4 = por %p2858_p1, %p69_p0  ;;  %p444_p7 = scmp.lt.s32.totalorder %s2720_s29, 3 }
  0x19   : > { %p2873_p6 = por %p437_p3, %p69_p0  ;;  %s2722_s22 = smov [#allocation13]  }
  0x1a   : > { %p2878_p8 = pnand %p1938_p5, %p444_p7  ;;  %s474_s23 = sshll.u32 %s2722_s22, 4  ;;  %s475_s23 = int_to_ptr.vmem [resolvable:$true] %s474_s23 }
  0x1b   : > { %s3540_s20 = scalar_select %p2873_p6, 1, 0 }
  0x1c   : > { %p2263_p9 = pneg %p2878_p8  ;;  %s2723_s30 = smov [#allocation16]  }
  0x1d   : > { %3541 = sst [smem:[#allocation25_spill]] %s3540_s20  ;;  %s506_s20 = sshll.u32 %s2723_s30, 4  ;;  %s507_s20 = int_to_ptr.vmem [resolvable:$true] %s506_s20 }
  0x1e   : > { %p2887_p11 = pnand %p2263_p9, %p2858_p1  ;;  %s2724_s24 = smov [#allocation15]  }
  0x1f   : > { %s490_s17 = sshll.u32 %s2724_s24, 4  ;;  %s2511_s14 = scalar_lea.vmem %s475_s23, 1024  ;;  %s491_s17 = int_to_ptr.vmem [resolvable:$true] %s490_s17 }
  0x20   : > { %p2502_p12 = pneg %p2887_p11  ;;  %p2512_p13 = scmp.ne.s32.totalorder %s475_s23, %s2511_s14 }
  0x21   : > { %p2519_p5 = scmp.lt.s32.totalorder %s475_s23, %s475_s23  ;;  %p2520_p7 = scmp.lt.s32.totalorder %s2511_s14, %s2511_s14 }
  0x22   : > { %p2514_p0 = pnand %p2512_p13, %p2502_p12 }
  0x23   : > { %p2521_p9 = por %p2520_p7, %p2519_p5 }
  0x24   : > { %p2515_p3 = pneg %p2514_p0 }
  0x26   : > { %p2522_p10 = pnand %p2521_p9, %p2515_p3 }
  0x28   : > { %2525 = shalt.err (!%p2522_p10)
}
  0x29   : > { %s3522_s22 = smov 64   ;;  %s3523_s30 = smov 4  }
  0x2a   : > { %s3544_s7 = sld [smem:[#allocation29_spill]]  ;;  %s2537_s10 = scalar_lea.vmem %s507_s20, 1024 }
  0x2b   : > { %p2538_p13 = scmp.ne.s32.totalorder %s507_s20, %s2537_s10  ;;  %p2545_p3 = scmp.lt.s32.totalorder %s507_s20, %s507_s20 }
  0x2c   : > { %p2546_p10 = scmp.lt.s32.totalorder %s2537_s10, %s2537_s10 }
  0x2d   : > { %p2540_p0 = pnand %p2538_p13, %p2502_p12 }
  0x2e   : > { %p2547_p7 = por %p2546_p10, %p2545_p3 }
  0x2f   : > { %p2541_p5 = pneg %p2540_p0 }
  0x30   : > { %2266 = dma.hbm_to_vmem [thread:$0]  (!%p2887_p11), %s3544_s7, 1024, %s475_s23, [#allocation14], %s3522_s22, %s3522_s22, %s3523_s30  }
  0x31   : > { %p2548_p9 = pnand %p2547_p7, %p2541_p5 }
  0x33   : > { %2551 = shalt.err (!%p2548_p9)
}
  0x34   : > { %s3545_s11 = sld [smem:[#allocation32_spill]]  ;;  %s2563_s12 = scalar_lea.vmem %s491_s17, 1024 }
  0x35   : > { %p2564_p6 = scmp.ne.s32.totalorder %s491_s17, %s2563_s12  ;;  %p2571_p3 = scmp.lt.s32.totalorder %s491_s17, %s491_s17 }
  0x36   : > { %p2572_p5 = scmp.lt.s32.totalorder %s2563_s12, %s2563_s12 }
  0x37   : > { %p2566_p13 = pnand %p2564_p6, %p2502_p12 }
  0x38   : > { %p2573_p10 = por %p2572_p5, %p2571_p3 }
  0x39   : > { %p2567_p0 = pneg %p2566_p13 }
  0x3a   : > { %2272 = dma.hbm_to_vmem [thread:$0]  (!%p2887_p11), %s3545_s11, 1024, %s507_s20, [#allocation17], %s3522_s22, %s3522_s22, %s3523_s30  }
  0x3b   : > { %p2574_p7 = pnand %p2573_p10, %p2567_p0 }
  0x3d   : > { %2577 = shalt.err (!%p2574_p7)
}
  0x3e   : > { %s3546_s9 = sld [smem:[#allocation30_spill]]  ;;  %s2727_s20 = smov [#allocation18]  }
  0x3f   : > { %s522_s23 = sshll.u32 %s2727_s20, 4  ;;  %s523_s23 = int_to_ptr.vmem [resolvable:$true] %s522_s23 }
  0x40   : > { %s2589_s24 = scalar_lea.vmem %s523_s23, 1024  ;;  %p2597_p0 = scmp.lt.s32.totalorder %s523_s23, %s523_s23 }
  0x41   : > { %p2590_p6 = scmp.ne.s32.totalorder %s523_s23, %s2589_s24  ;;  %p2598_p3 = scmp.lt.s32.totalorder %s2589_s24, %s2589_s24 }
  0x43   : > { %p2592_p9 = pnand %p2590_p6, %p2502_p12  ;;  %p2599_p5 = por %p2598_p3, %p2597_p0 }
  0x44   : > { %2269 = dma.hbm_to_vmem [thread:$0]  (!%p2887_p11), %s3546_s9, 1024, %s491_s17, [#allocation14], %s3522_s22, %s3522_s22, %s3523_s30  }
  0x45   : > { %p2593_p13 = pneg %p2592_p9 }
  0x47   : > { %p2600_p10 = pnand %p2599_p5, %p2593_p13 }
  0x49   : > { %2603 = shalt.err (!%p2600_p10)
}
  0x4a   : > { %s3547_s13 = sld [smem:[#allocation34_spill]]  ;;  %s44_s12 = sadd.s32 1, %s2716_s28 }
  0x4b   : > { %s56_s0 = sadd.s32 1, %s2708_s26  ;;  %p45_p12 = scmp.ge.s32.totalorder %s44_s12, 2 }
  0x4c   : > { %p63_p7 = scmp.ne.s32.totalorder %s2708_s26, %s2704_s25  ;;  %p64_p6 = scmp.eq.s32.totalorder %s2720_s29, 0 }
  0x4d   : > { %p2288_p9 = scmp.lt.s32.totalorder %s2720_s29, 2  ;;  %s3571_s12 = smov (%p45_p12, %s44_s12), 0 }
  0x4e   : > { %3548 = sst [smem:[#allocation26_spill]] %s3571_s12  ;;  %p65_p13 = por %p64_p6, %p63_p7 }
  0x4f   : > { %p2947_p0 = por %p2862_p2, %p63_p7  ;;  %s51_s16 = ssub.s32 %s2716_s28, %s3571_s12 }
  0x50   : > { %2275 = dma.hbm_to_vmem [thread:$0]  (!%p2887_p11), %s3547_s13, 1024, %s523_s23, [#allocation17], %s3522_s22, %s3522_s22, %s3523_s30  }
  0x51   : > { %s545_s20 = sand.u32 1, %s2708_s26   ;;  %p54_p3 = scmp.eq.s32.totalorder %s51_s16, 0 }
  0x52   : > { %s1944_s23 = sshll.u32 %s545_s20, 5  ;;  %s2024_s24 = sshll.u32 %s2716_s28, 9 }
  0x53   : > { %s2956_s17 = scalar_select %p54_p3, %s2708_s26, %s56_s0  }
  0x54   : > { %s3550_s30 = sld [smem:[#allocation27_spill]]  ;;  %s549_s9 = scalar_lea.vmem [#allocation10], %s1944_s23 }
  0x55   : > { %s557_s11 = sshll.u32 %s549_s9, 4  ;;  %p2963_p11 = pnand %p2288_p9, %p65_p13  ;;  %s558_s11 = int_to_ptr.vmem [resolvable:$true] %s557_s11 }
  0x56   : > { %s546_s13 = scalar_lea.sflag [#allocation11], %s545_s20  ;;  %s2617_s16 = scalar_lea.vmem %s558_s11, 512 }
  0x57   : > { %p2606_p2 = pneg %p2963_p11  ;;  %p2618_p5 = scmp.ne.s32.totalorder %s558_s11, %s2617_s16 }
  0x58   : > { %s2728_s0 = smov [#allocation10]  }
  0x59   : > { %p2620_p10 = pnand %p2618_p5, %p2606_p2  ;;  %s2622_s12 = sshll.u32 %s2728_s0, 4  ;;  %s2623_s12 = int_to_ptr.vmem [resolvable:$false] %s2622_s12 }
  0x5a   : > { %s556_s7 = scalar_lea.hbm %s3550_s30, %s2024_s24  ;;  %s2624_s22 = scalar_lea.vmem %s2623_s12, 1024 }
  0x5b   : > { %p2621_p12 = pneg %p2620_p10  ;;  %p2625_p7 = scmp.lt.s32.totalorder %s558_s11, %s2623_s12 }
  0x5c   : > { %p2626_p6 = scmp.lt.s32.totalorder %s2624_s22, %s2617_s16 }
  0x5e   : > { %p2627_p3 = por %p2626_p6, %p2625_p7 }
  0x60   : > { %p2628_p9 = pnand %p2627_p3, %p2621_p12 }
  0x62   : > { %2631 = shalt.err (!%p2628_p9)
}
  0x63   : > { %s3552_s9 = smov 4   ;;  %s3553_s30 = smov 64  }
  0x64   : > { %2279 = dma.hbm_to_vmem [thread:$0]  (!%p2963_p11), %s556_s7, 512, %s558_s11, %s546_s13, %s3553_s30, %s3553_s30, %s3552_s9  }
  0x65   : > { %569 = sbr.rel (%p2878_p8) target bundleno = 663 (0x297), region = 88  ;;  %s2977_s20 = sand.u32 (!%p2878_p8), 1, %s2704_s25  }
  0x66   : > { %s1948_s12 = sshll.u32 (!%p2878_p8), %s2977_s20, 5  ;;  %s572_s23 = scalar_lea.sflag (!%p2878_p8), [#allocation11], %s2977_s20 }
  0x67   : > { %s2981_s24 = scalar_lea.vmem (!%p2878_p8), [#allocation10], %s1948_s12 }
  0x6a   : > { %2683 = dma.done.wait (%p2868_p4), %s572_s23, 512  }
  0x6b   : > { %2685 = vsyncadd (%p2868_p4), %s572_s23, 4294966784 }
  0x6c   : > { %2687 = dma.done.wait (%p2858_p1), [#allocation14], 2048  }
  0x6d   : > { %2689 = vsyncadd (%p2858_p1), [#allocation14], 4294965248 }
  0x6e   : > { %2691 = dma.done.wait (%p2858_p1), [#allocation17], 2048  }
  0x6f   : > { %2693 = vsyncadd (%p2858_p1), [#allocation17], 4294965248  ;;  %s2995_s7 = scalar_lea.vmem [#allocation19], %s1948_s12  ;;  %p1954_p8 = scmp.ne.s32.totalorder %s2712_s27, 0 }
  0x71   : > { %648 = sbr.rel (%p1954_p8) target bundleno = 121 (0x79), region = 112 }
  0x76   : > { %v2729_v0 = vmov 0.0   ;;  %v2730_v1 = vmov -1e+38  }
  0x77   : > { %649 = vst [vmem:[#allocation9] sm:$0xff] %v2729_v0  ;;  %650 = vst [vmem:[#allocation6] sm:$0xff] %v2729_v0 }
  0x78   : > { %651 = vst [vmem:[#allocation7] sm:$0xff] %v2729_v0  ;;  %652 = vst [vmem:[#allocation8] sm:$0xff] %v2730_v1 }
  0x79 PF: > { %v2352_v2 = vld [vmem:[#allocation13 + $0x38] sm:$0xff]   ;;  %v2353_v3 = vld [vmem:[#allocation13 + $0x30] sm:$0xff]   ;;  %v2354_v4 = vld [vmem:[#allocation13 + $0x28] sm:$0xff]   ;;  %s3554_s18 = sld [smem:[#allocation28_spill]]  ;;  %s1813_s11 = sshll.u32 %s2995_s7, 4  ;;  %s3451_s11 = int_to_ptr.vmem [resolvable:$true] %s1813_s11 }
  0x7a   : > { %2147 = vmatprep.subr.bf16.mxu0 %v2352_v2  ;;  %v2358_v5 = vld [vmem:[#allocation15 + $0x38] sm:$0xff]   ;;  %v2355_v6 = vld [vmem:[#allocation13 + $0x20] sm:$0xff]   ;;  %v2360_v7 = vld [vmem:[#allocation15 + $0x30] sm:$0xff]   ;;  %s3555_s21 = sld [smem:[#allocation36_spill]]  ;;  %s1799_s14 = scalar_lea.sflag [#allocation12], %s2977_s20 }
  0x7b   : > { %2148 = vmatpush3.bf16.msra.mxu0 %v2352_v2  ;;  %2171 = vmatprep.subr.bf16.mxu1 %v2358_v5  ;;  %v2356_v8 = vld [vmem:[#allocation13 + $0x18] sm:$0xff]   ;;  %v2362_v9 = vld [vmem:[#allocation15 + $0x28] sm:$0xff]   ;;  %v2035_v10 = vld [vmem:[%s2981_s24] sm:$0xff]   ;;  %s3556_s16 = sld [smem:[#allocation31_spill]]  ;;  %s2731_s19 = smov [#allocation19]  }
  0x7c   : > { %2149 = vmatprep.subr.bf16.mxu0 %v2353_v3  ;;  %2172 = vmatpush3.bf16.msra.mxu1 %v2358_v5  ;;  %v2092_v11 = vld [vmem:[%s2981_s24 + $0x18] sm:$0xff]   ;;  %v3002_v13 = vunpack.c.l.bf16 %v2035_v10  ;;  %v3004_v14 = vunpack.c.h.bf16 %v2035_v10  ;;  %v3016_v17 = vld [vmem:[%s3503_s2] ss:$0 sm:$0xff]  ;;  %v2090_v21 = vld [vmem:[%s2981_s24 + $0x8] sm:$0xff]   ;;  %s3557_s9 = sld [smem:[#allocation33_spill]] }
  0x7d   : > { %2173 = vmatprep.subr.bf16.mxu1 %v2360_v7  ;;  %v3006_v15 = vunpack.c.h.bf16 %v2092_v11  ;;  %v3021_v18 = vld [vmem:[%s3506_s5] ss:$0 sm:$0xff]  ;;  %v2357_v29 = vld [vmem:[#allocation13 + $0x10] sm:$0xff]   ;;  %v2040_v34 = vunpack.c.l.bf16 %v2090_v21  ;;  %v3046_v35 = vunpack.c.h.bf16 %v2090_v21  ;;  %v2365_v38 = vld [vmem:[#allocation15 + $0x18] sm:$0xff]   ;;  %v3048_v39 = vunpack.c.l.bf16 %v2092_v11  ;;  %s3558_s23 = sld [smem:[#allocation35_spill]] }
  0x7e   : > { %v3000_v12 = vld [vmem:[#allocation9] sm:$0xff]  ;;  %v3028_v20 = vld [vmem:[%s3507_s6] ss:$0 sm:$0xff]  ;;  %v694_v24 = vmul.f32 %v3002_v13, %v3016_v17  ;;  %v762_v25 = vmul.f32 %v3002_v13, %v3021_v18  ;;  %v763_v27 = vmul.f32 %v3004_v14, %v3021_v18  ;;  %v695_v42 = vmul.f32 %v3004_v14, %v3016_v17  ;;  %v2091_v43 = vld [vmem:[%s2981_s24 + $0x10] sm:$0xff]   ;;  %s2033_s24 = sshll.u32 %s2712_s27, 9  ;;  %s3559_s1 = sld [smem:[#allocation37_spill]] }
  0x7f   : > { %2150 = vmatpush3.bf16.msra.mxu0 %v2353_v3  ;;  %v3011_v16 = vld [vmem:[%s3554_s18] ss:$0 sm:$0xff]  ;;  %v693_v19 = vmul.f32 %v3016_v17, %v3000_v12  ;;  %670 = vst [vmem:[#allocation9] sm:$0xff] %v3006_v15  ;;  %v777_v28 = vmul.f32 %v3028_v20, %v3000_v12  ;;  %v778_v32 = vmul.f32 %v3002_v13, %v3028_v20  ;;  %v2359_v44 = vld [vmem:[#allocation13 + $0x8] sm:$0xff]   ;;  %v3059_v48 = vunpack.c.l.bf16 %v2091_v43  ;;  %v2367_v53 = vld [vmem:[#allocation15 + $0x10] sm:$0xff]   ;;  %s2632_s27 = scalar_lea.vmem %s3451_s11, 512 }
  0x80   : > { %2151 = vmatprep.subr.bf16.mxu0 %v2354_v4  ;;  %2174 = vmatpush3.bf16.msra.mxu1 %v2360_v7  ;;  %v678_v22 = vmul.f32 %v3002_v13, %v3011_v16  ;;  %v679_v23 = vmul.f32 %v3004_v14, %v3011_v16  ;;  %v2363_v26 = vld [vmem:[#allocation15 + $0x20] sm:$0xff]   ;;  %v779_v40 = vmul.f32 %v3004_v14, %v3028_v20  ;;  %v3065_v52 = vunpack.c.h.bf16 %v2091_v43  ;;  %v2369_v10 = vld [vmem:[#allocation15 + $0x8] sm:$0xff]   ;;  %p2633_p1 = scmp.ne.s32.totalorder %s3451_s11, %s2632_s27 }
  0x81   : > { %2175 = vmatprep.subr.bf16.mxu1 %v2362_v9  ;;  %v785_v33 = vadd.f32 %v777_v28, %v762_v25  ;;  %v786_v37 = vadd.f32 %v778_v32, %v763_v27  ;;  %v680_v41 = vmul.f32 %v2040_v34, %v3011_v16  ;;  %v764_v46 = vmul.f32 %v2040_v34, %v3021_v18  ;;  %v2361_v56 = vld [vmem:[#allocation13] sm:$0xff]   ;;  %v2366_v32 = vld [vmem:[#allocation16 + $0x30] sm:$0xff]  }
  0x82   : > { %v701_v30 = vadd.f32 %v693_v19, %v678_v22  ;;  %v702_v31 = vadd.f32 %v694_v24, %v679_v23  ;;  %v765_v47 = vmul.f32 %v3046_v35, %v3021_v18  ;;  %v681_v49 = vmul.f32 %v3046_v35, %v3011_v16  ;;  %v1957_v1 = vld [vmem:[%s3504_s3] ss:$0 sm:$0xff]  ;;  %v2364_v19 = vld [vmem:[#allocation16 + $0x38] sm:$0xff]   ;;  %p2634_p4 = pnand %p2633_p1, %p2947_p0 }
  0x83   : > { %2152 = vmatpush3.bf16.msra.mxu0 %v2354_v4  ;;  %v2053_v45 = vpack.c.bf16 %v786_v37, %v785_v33  ;;  %v696_v50 = vmul.f32 %v2040_v34, %v3016_v17  ;;  %v780_v51 = vmul.f32 %v2040_v34, %v3028_v20  ;;  %v682_v54 = vmul.f32 %v3059_v48, %v3011_v16  ;;  %v3089_v2 = vld [vmem:[%s3505_s4] ss:$0 sm:$0xff] }
  0x84   : > { %2153 = vmatprep.subr.bf16.mxu0 %v2355_v6  ;;  %2176 = vmatpush3.bf16.msra.mxu1 %v2362_v9  ;;  %v709_v36 = vpack.c.bf16 %v702_v31, %v701_v30  ;;  %v697_v55 = vmul.f32 %v3046_v35, %v3016_v17  ;;  %v3073_v57 = vmul.f32 %v3048_v39, %v3021_v18  ;;  %p2635_p13 = pneg %p2634_p4 }
  0x85   : > { %2177 = vmatprep.subr.bf16.mxu1 %v2363_v26  ;;  %2054 = vst [vmem:[#allocation5] sm:$0xff] %v2053_v45   ;;  %v769_v58 = vmul.f32 %v3006_v15, %v3021_v18  ;;  %v683_v59 = vmul.f32 %v3065_v52, %v3011_v16  ;;  %v698_v60 = vmul.f32 %v3059_v48, %v3016_v17 }
  0x86   : > { %2163 = vmatprep.mubr.bf16.mxu0 %v709_v36  ;;  %v784_v61 = vmul.f32 %v3048_v39, %v3028_v20  ;;  %v703_v62 = vadd.f32 %v695_v42, %v680_v41  ;;  %v787_v63 = vadd.f32 %v779_v40, %v764_v46  ;;  %v788_v0 = vadd.f32 %v780_v51, %v765_v47 }
  0x87   : > { %2154 = vmatpush3.bf16.msra.mxu0 %v2355_v6  ;;  %v704_v3 = vadd.f32 %v696_v50, %v681_v49  ;;  %v720_v4 = vmul.f32 %v3002_v13, %v1957_v1  ;;  %v721_v5 = vmul.f32 %v3004_v14, %v1957_v1  ;;  %v735_v6 = vmul.f32 %v3089_v2, %v3000_v12 }
  0x88   : > { %2155 = vmatprep.subr.bf16.mxu0 %v2356_v8  ;;  %2178 = vmatpush3.bf16.msra.mxu1 %v2363_v26  ;;  %v705_v7 = vadd.f32 %v697_v55, %v682_v54  ;;  %v699_v9 = vmul.f32 %v3065_v52, %v3016_v17  ;;  %v736_v11 = vmul.f32 %v3002_v13, %v3089_v2  ;;  %v2368_v54 = vld [vmem:[#allocation16 + $0x28] sm:$0xff]  }
  0x89   : > { %2179 = vmatprep.subr.bf16.mxu1 %v2365_v38  ;;  %v706_v21 = vadd.f32 %v698_v60, %v683_v59  ;;  %v743_v22 = vadd.f32 %v735_v6, %v720_v4  ;;  %v722_v23 = vmul.f32 %v2040_v34, %v1957_v1  ;;  %v723_v24 = vmul.f32 %v3046_v35, %v1957_v1  ;;  %v2381_v6 = vld [vmem:[#allocation18 + $0x30] sm:$0xff]  }
  0x8a   : > { %v744_v12 = vadd.f32 %v736_v11, %v721_v5  ;;  %v737_v25 = vmul.f32 %v3004_v14, %v3089_v2  ;;  %v738_v26 = vmul.f32 %v2040_v34, %v3089_v2  ;;  %v2058_v27 = vpack.c.bf16 %v788_v0, %v787_v63  ;;  %v2374_v0 = vld [vmem:[#allocation16 + $0x8] sm:$0xff]   ;;  %v2380_v5 = vld [vmem:[#allocation18 + $0x38] sm:$0xff]  }
  0x8b   : > { %2156 = vmatpush3.bf16.msra.mxu0 %v2356_v8  ;;  %v684_v8 = vmul.f32 %v3048_v39, %v3011_v16  ;;  %v710_v28 = vpack.c.bf16 %v704_v3, %v703_v62  ;;  %v724_v13 = vmul.f32 %v3059_v48, %v1957_v1  ;;  %v725_v30 = vmul.f32 %v3065_v52, %v1957_v1  ;;  %v2386_v11 = vld [vmem:[#allocation18 + $0x8] sm:$0xff]  }
  0x8c   : > { %2157 = vmatprep.subr.bf16.mxu0 %v2357_v29  ;;  %2180 = vmatpush3.bf16.msra.mxu1 %v2365_v38  ;;  %v739_v31 = vmul.f32 %v3046_v35, %v3089_v2  ;;  %v685_v33 = vmul.f32 %v3006_v15, %v3011_v16  ;;  %v700_v14 = vmul.f32 %v3048_v39, %v3016_v17 }
  0x8d   : > { %2181 = vmatprep.subr.bf16.mxu1 %v2367_v53  ;;  %v751_v34 = vpack.c.bf16 %v744_v12, %v743_v22  ;;  %2093 = vst [vmem:[#allocation5 + $0x8] sm:$0xff] %v2058_v27   ;;  %v740_v36 = vmul.f32 %v3059_v48, %v3089_v2  ;;  %v792_v37 = vadd.f32 %v784_v61, %v769_v58  ;;  %v2370_v61 = vld [vmem:[#allocation16 + $0x20] sm:$0xff]   ;;  %v1125_v22 = vld [vmem:[#allocation8] sm:$0xff] }
  0x8e   : > { %v711_v38 = vpack.c.bf16 %v706_v21, %v705_v7  ;;  %v707_v40 = vadd.f32 %v699_v9, %v684_v8  ;;  %v766_v41 = vmul.f32 %v3059_v48, %v3021_v18  ;;  %v745_v42 = vadd.f32 %v737_v25, %v722_v23  ;;  %v2382_v7 = vld [vmem:[#allocation18 + $0x28] sm:$0xff]   ;;  %v2383_v8 = vld [vmem:[#allocation18 + $0x20] sm:$0xff]   ;;  %v2384_v9 = vld [vmem:[#allocation18 + $0x18] sm:$0xff]  }
  0x8f   : > { %2158 = vmatpush3.bf16.msra.mxu0 %v2357_v29  ;;  %v2371_v29 = vld [vmem:[#allocation15] sm:$0xff]   ;;  %2187 = vmatprep.mubr.bf16.mxu1 %v751_v34  ;;  %v746_v16 = vadd.f32 %v738_v26, %v723_v24  ;;  %v767_v17 = vmul.f32 %v3065_v52, %v3021_v18  ;;  %v747_v43 = vadd.f32 %v739_v31, %v724_v13 }
  0x90   : > { %2159 = vmatprep.subr.bf16.mxu0 %v2359_v44  ;;  %2182 = vmatpush3.bf16.msra.mxu1 %v2367_v53  ;;  %v781_v45 = vmul.f32 %v3046_v35, %v3028_v20  ;;  %v782_v46 = vmul.f32 %v3059_v48, %v3028_v20  ;;  %v708_v47 = vadd.f32 %v700_v14, %v685_v33  ;;  %v3135_v21 = vld [vmem:[%s3516_s15] ss:$0 sm:$0xff] }
  0x91   : > { %2183 = vmatprep.subr.bf16.mxu1 %v2369_v10  ;;  %v726_v49 = vmul.f32 %v3048_v39, %v1957_v1  ;;  %v783_v50 = vmul.f32 %v3065_v52, %v3028_v20  ;;  %v727_v18 = vmul.f32 %v3006_v15, %v1957_v1  ;;  %v752_v35 = vpack.c.bf16 %v746_v16, %v745_v42  ;;  %v2376_v15 = vld [vmem:[#allocation5] sm:$0xff]  }
  0x92   : > { %v789_v51 = vadd.f32 %v781_v45, %v766_v41  ;;  %v790_v53 = vadd.f32 %v782_v46, %v767_v17  ;;  %v741_v48 = vmul.f32 %v3065_v52, %v3089_v2  ;;  %v742_v55 = vmul.f32 %v3048_v39, %v3089_v2  ;;  %v2372_v39 = vld [vmem:[#allocation16 + $0x18] sm:$0xff]   ;;  %v2375_v1 = vld [vmem:[#allocation16] sm:$0xff]  }
  0x93   : > { %2160 = vmatpush3.bf16.msra.mxu0 %v2359_v44  ;;  %v748_v44 = vadd.f32 %v740_v36, %v725_v30  ;;  %v712_v59 = vpack.c.bf16 %v708_v47, %v707_v40  ;;  %v3140_v24 = vld [vmem:[%s3509_s8] ss:$0 sm:$0xff]  ;;  %v1156_v12 = vadd.f32 %v3135_v21, %v1125_v22 }
  0x94   : > { %2161 = vmatprep.subr.bf16.mxu0 %v2361_v56  ;;  %2184 = vmatpush3.bf16.msra.mxu1 %v2369_v10  ;;  %v2063_v20 = vpack.c.bf16 %v790_v53, %v789_v51  ;;  %v749_v62 = vadd.f32 %v741_v48, %v726_v49  ;;  %v750_v63 = vadd.f32 %v742_v55, %v727_v18  ;;  %v2377_v2 = vld [vmem:[#allocation5 + $0x8] sm:$0xff]   ;;  %v2385_v10 = vld [vmem:[#allocation18 + $0x10] sm:$0xff]   ;;  %v3146_v25 = vld [vmem:[%s3555_s21] ss:$0 sm:$0xff]  ;;  %s3449_s21 = scalar_lea.hbm %s3559_s1, %s2033_s24 }
  0x95   : > { %2185 = vmatprep.subr.bf16.mxu1 %v2371_v29  ;;  %v753_v58 = vpack.c.bf16 %v748_v44, %v747_v43 }
  0x96   : > { %2094 = vst [vmem:[#allocation5 + $0x10] sm:$0xff] %v2063_v20   ;;  %v754_v52 = vpack.c.bf16 %v750_v63, %v749_v62 }
  0x97   : > { %2162 = vmatpush3.bf16.msra.mxu0 %v2361_v56  ;;  %v791_v56 = vadd.f32 %v783_v50, %v3073_v57  ;;  %v2373_v57 = vld [vmem:[#allocation16 + $0x10] sm:$0xff]  }
  0x98   : > { %2195 = vmatprep.subr.bf16.mxu0 %v2364_v19  ;;  %2186 = vmatpush3.bf16.msra.mxu1 %v2371_v29 }
  0x99   : > { %v2068_v60 = vpack.c.bf16 %v792_v37, %v791_v56  ;;  %2219 = vmatprep.subr.bf16.mxu1 %v2380_v5 }
  0x9a   : > { %2164 = vmatmul.mubr.bf16.vlgmr.msra.gmra.mxu0 %v710_v28 }
  0x9b   : > { %2196 = vmatpush3.bf16.msra.mxu0 %v2364_v19  ;;  %2167 = vmatprep.mubr.bf16.mxu0 %v711_v38  ;;  %2095 = vst [vmem:[#allocation5 + $0x18] sm:$0xff] %v2068_v60   ;;  %v2387_v19 = vld [vmem:[#allocation18] sm:$0xff]  }
  0x9c   : > { %2197 = vmatprep.subr.bf16.mxu0 %v2366_v32  ;;  %2188 = vmatmul.mubr.bf16.vlgmr.msra.gmra.mxu1 %v752_v35 }
  0x9d   : > { %2191 = vmatprep.mubr.bf16.mxu1 %v753_v58  ;;  %v2378_v3 = vld [vmem:[#allocation5 + $0x10] sm:$0xff]   ;;  %2220 = vmatpush3.bf16.msra.mxu1 %v2380_v5  ;;  %v1124_v5 = vld [vmem:[#allocation7] sm:$0xff] }
  0x9e   : > { %2221 = vmatprep.subr.bf16.mxu1 %v2381_v6 }
  0x9f   : > { %2198 = vmatpush3.bf16.msra.mxu0 %v2366_v32 }
  0xa0   : > { %2199 = vmatprep.subr.bf16.mxu0 %v2368_v54 }
  0xa1   : > { %2222 = vmatpush3.bf16.msra.mxu1 %v2381_v6 }
  0xa2   : > { %2168 = vmatmul.mubr.bf16.gmra.mxu0 %v712_v59  ;;  %v2379_v4 = vld [vmem:[#allocation5 + $0x18] sm:$0xff]   ;;  %2223 = vmatprep.subr.bf16.mxu1 %v2382_v7 }
  0xa3   : > { %2200 = vmatpush3.bf16.msra.mxu0 %v2368_v54  ;;  %2211 = vmatprep.mubr.bf16.mxu0 %v2376_v15 }
  0xa4   : > { %2201 = vmatprep.subr.bf16.mxu0 %v2370_v61  ;;  %2192 = vmatmul.mubr.bf16.gmra.mxu1 %v754_v52 }
  0xa5   : > { %2224 = vmatpush3.bf16.msra.mxu1 %v2382_v7 }
  0xa6   : > { %2225 = vmatprep.subr.bf16.mxu1 %v2383_v8 }
  0xa7   : > { %2202 = vmatpush3.bf16.msra.mxu0 %v2370_v61 }
  0xa8   : > { %2203 = vmatprep.subr.bf16.mxu0 %v2372_v39 }
  0xa9   : > { %2226 = vmatpush3.bf16.msra.mxu1 %v2383_v8 }
  0xaa   : > { %2227 = vmatprep.subr.bf16.mxu1 %v2384_v9 }
  0xab   : > { %2204 = vmatpush3.bf16.msra.mxu0 %v2372_v39 }
  0xac   : > { %2205 = vmatprep.subr.bf16.mxu0 %v2373_v57 }
  0xad   : > { %2228 = vmatpush3.bf16.msra.mxu1 %v2384_v9 }
  0xae   : > { %2229 = vmatprep.subr.bf16.mxu1 %v2385_v10 }
  0xaf   : > { %2206 = vmatpush3.bf16.msra.mxu0 %v2373_v57 }
  0xb0   : > { %2207 = vmatprep.subr.bf16.mxu0 %v2374_v0 }
  0xb1   : > { %2230 = vmatpush3.bf16.msra.mxu1 %v2385_v10 }
  0xb2   : > { %2231 = vmatprep.subr.bf16.mxu1 %v2386_v11 }
  0xb3   : > { %2208 = vmatpush3.bf16.msra.mxu0 %v2374_v0 }
  0xb4   : > { %2209 = vmatprep.subr.bf16.mxu0 %v2375_v1 }
  0xb5   : > { %2232 = vmatpush3.bf16.msra.mxu1 %v2386_v11 }
  0xb6   : > { %2233 = vmatprep.subr.bf16.mxu1 %v2387_v19 }
  0xb7   : > { %2210 = vmatpush3.bf16.msra.mxu0 %v2375_v1 }
  0xb9   : > { %2234 = vmatpush3.bf16.msra.mxu1 %v2387_v19 }
  0xba   : > { %2212 = vmatmul.mubr.bf16.vlgmr.msra.gmra.mxu0 %v2377_v2 }
  0xbb   : > { %2215 = vmatprep.mubr.bf16.mxu0 %v2378_v3 }
  0xc2   : > { %2216 = vmatmul.mubr.bf16.gmra.mxu0 %v2379_v4 }
 0x15a   : > { %v2165_v23 = vpop.f32.mrf.mxu0 }
 0x15b   : > { %v947_v31 = vadd.f32 %v2165_v23, %v3140_v24 }
 0x15c   : > { %v938_v26 = vpop.f32.mrf.mxu0 }
 0x15d   : > { %v939_v27 = vadd.f32 %v3140_v24, %v938_v26  ;;  %v1207_v44 = vadd.f32 %v3146_v25, %v947_v31 }
 0x15e   : > { %v2166_v28 = vpop.f32.mrf.mxu0 }
 0x15f   : > { %v1134_v29 = vadd.f32 %v3146_v25, %v939_v27  ;;  %v1157_v13 = vmax.f32 %v1156_v12, %v939_v27  ;;  %v3165_v59 = vadd.f32 %v2166_v28, %v3140_v24 }
 0x160   : > { %v941_v30 = vpop.f32.mrf.mxu0 }
 0x161   : > { %v1135_v32 = vmax.f32 %v1125_v22, %v1134_v29  ;;  %v1158_v33 = vsub.f32 %v1156_v12, %v1157_v13  ;;  %v1161_v14 = vsub.f32 %v939_v27, %v1157_v13  ;;  %v942_v34 = vadd.f32 %v3140_v24, %v941_v30 }
 0x162   : > { %v1190_v36 = vadd.f32 %v3135_v21, %v1157_v13  ;;  %v2169_v37 = vpop.f32.mrf.mxu0  ;;  %v3188_v6 = vadd.f32 %v3146_v25, %v3165_v59 }
 0x163   : > { %v1136_v38 = vsub.f32 %v1125_v22, %v1135_v32  ;;  %v1139_v40 = vsub.f32 %v1134_v29, %v1135_v32  ;;  %v1159_v41 = vmul.f32 1.442695, %v1158_v33  ;;  %v1162_v42 = vmul.f32 1.442695, %v1161_v14 }
 0x164   : > { %v1173_v16 = vadd.f32 %v3146_v25, %v942_v34  ;;  %v1191_v17 = vmax.f32 %v1190_v36, %v942_v34  ;;  %v954_v43 = vpop.f32.mrf.mxu0  ;;  %v3180_v1 = vadd.f32 %v2169_v37, %v3140_v24 }
 0x165   : > { %v1137_v45 = vmul.f32 1.442695, %v1136_v38  ;;  %v1140_v46 = vmul.f32 1.442695, %v1139_v40  ;;  %2388 = vpow2.f32 %v1159_v41  ;;  %v955_v54 = vadd.f32 %v3140_v24, %v954_v43  ;;  %v3210_v41 = vpop.f32.mrf.mxu1 }
 0x166   : > { %2390 = vpow2.f32 %v1162_v42  ;;  %v1174_v47 = vmax.f32 %v1157_v13, %v1173_v16  ;;  %v1192_v49 = vsub.f32 %v1190_v36, %v1191_v17  ;;  %v1195_v50 = vsub.f32 %v942_v34, %v1191_v17  ;;  %v3155_v18 = vpop.f32.mrf.mxu0 }
 0x167   : > { %2392 = vpow2.f32 %v1137_v45  ;;  %v1208_v51 = vmax.f32 %v1191_v17, %v1207_v44  ;;  %v3158_v53 = vadd.f32 %v3135_v21, %v1191_v17  ;;  %v1275_v62 = vadd.f32 %v3146_v25, %v955_v54 }
 0x168   : > { %v1175_v35 = vsub.f32 %v1157_v13, %v1174_v47  ;;  %v1193_v48 = vmul.f32 1.442695, %v1192_v49  ;;  %v1196_v55 = vmul.f32 1.442695, %v1195_v50  ;;  %v957_v20 = vpop.f32.mrf.mxu0  ;;  %v1178_v60 = vsub.f32 %v1173_v16, %v1174_v47 }
 0x169   : > { %v1209_v56 = vsub.f32 %v1191_v17, %v1208_v51  ;;  %v3162_v58 = vmax.f32 %v3158_v53, %v947_v31  ;;  %v3173_v39 = vadd.f32 %v3140_v24, %v957_v20  ;;  %v1212_v57 = vsub.f32 %v1207_v44, %v1208_v51 }
 0x16a   : > { %2394 = vpow2.f32 %v1193_v48  ;;  %v1176_v15 = vmul.f32 1.442695, %v1175_v35  ;;  %v1179_v0 = vmul.f32 1.442695, %v1178_v60  ;;  %v3197_v22 = vadd.f32 %v3146_v25, %v3180_v1  ;;  %v1082_v48 = vpop.f32.mrf.mxu1 }
 0x16b   : > { %2396 = vpow2.f32 %v1140_v46  ;;  %v3169_v61 = vadd.f32 %v3135_v21, %v3162_v58  ;;  %v1210_v63 = vmul.f32 1.442695, %v1209_v56  ;;  %v1229_v2 = vsub.f32 %v947_v31, %v3162_v58 }
 0x16c   : > { %2398 = vpow2.f32 %v1196_v55  ;;  %v1309_v7 = vadd.f32 %v3146_v25, %v3173_v39  ;;  %v1213_v11 = vmul.f32 1.442695, %v1212_v57  ;;  %v1242_v29 = vmax.f32 %v3162_v58, %v3188_v6 }
 0x16d   : > { %v3177_v52 = vmax.f32 %v3169_v61, %v3165_v59  ;;  %2400 = vpow2.f32 %v1176_v15  ;;  %v1230_v23 = vmul.f32 1.442695, %v1229_v2 }
 0x16e   : > { %2402 = vpow2.f32 %v1210_v63  ;;  %v1243_v43 = vsub.f32 %v3162_v58, %v1242_v29  ;;  %v1246_v56 = vsub.f32 %v3188_v6, %v1242_v29 }
 0x16f   : > { %v1276_v3 = vmax.f32 %v3177_v52, %v1275_v62  ;;  %v1292_v4 = vadd.f32 %v3135_v21, %v3177_v52  ;;  %2404 = vpow2.f32 %v1179_v0  ;;  %v1263_v36 = vsub.f32 %v3165_v59, %v3177_v52 }
 0x170   : > { %2406 = vpow2.f32 %v1213_v11  ;;  %v1226_v0 = vsub.f32 %v3158_v53, %v3162_v58  ;;  %v1247_v6 = vmul.f32 1.442695, %v1246_v56  ;;  %v3255_v58 = vld [vmem:[#allocation6] sm:$0xff]  ;;  %v1260_v29 = vsub.f32 %v3169_v61, %v3177_v52 }
 0x171   : > { %v1277_v8 = vsub.f32 %v3177_v52, %v1276_v3  ;;  %v1280_v9 = vsub.f32 %v1275_v62, %v1276_v3  ;;  %v1293_v10 = vmax.f32 %v1292_v4, %v955_v54  ;;  %2408 = vpow2.f32 %v1230_v23  ;;  %v3235_v62 = vld [vmem:[%s3556_s16] ss:$0 sm:$0xff]  ;;  %s2636_s16 = sshll.u32 %s2731_s19, 4  ;;  %s2637_s16 = int_to_ptr.vmem [resolvable:$false] %s2636_s16 }
 0x172   : > { %v3193_v19 = vpop.eup %2388  ;;  %v1244_v3 = vmul.f32 1.442695, %v1243_v43  ;;  %v3261_v23 = vld [vmem:[%s3557_s9] ss:$0 sm:$0xff]  ;;  %s2638_s0 = scalar_lea.vmem %s2637_s16, 1024  ;;  %p2639_p11 = scmp.lt.s32.totalorder %s3451_s11, %s2637_s16 }
 0x173   : > { %v3199_v12 = vpop.eup %2390  ;;  %v1167_v26 = vmul.f32 %v3193_v19, %v1124_v5  ;;  %v1278_v27 = vmul.f32 1.442695, %v1277_v8  ;;  %v1294_v28 = vsub.f32 %v1292_v4, %v1293_v10  ;;  %v1281_v30 = vmul.f32 1.442695, %v1280_v9  ;;  %p2640_p2 = scmp.lt.s32.totalorder %s2638_s0, %s2632_s27 }
 0x174   : > { %v3204_v13 = vpop.eup %2392  ;;  %v1297_v31 = vsub.f32 %v955_v54, %v1293_v10  ;;  %v1310_v32 = vmax.f32 %v1293_v10, %v1309_v7  ;;  %v1326_v33 = vadd.f32 %v3135_v21, %v1293_v10  ;;  %v3244_v4 = vadd.f32 %v3235_v62, %v1082_v48 }
 0x175   : > { %v1168_v14 = vadd.f32 %v3199_v12, %v1167_v26  ;;  %v1295_v34 = vmul.f32 1.442695, %v1294_v28  ;;  %2410 = vpow2.f32 %v1278_v27  ;;  %v1145_v17 = vmul.f32 %v3204_v13, %v1124_v5  ;;  %v3246_v5 = vpop.f32.mrf.mxu1  ;;  %p2641_p5 = por %p2640_p2, %p2639_p11 }
 0x176   : > { %v1298_v37 = vmul.f32 1.442695, %v1297_v31  ;;  %v1311_v38 = vsub.f32 %v1293_v10, %v1310_v32  ;;  %v1314_v40 = vsub.f32 %v1309_v7, %v1310_v32  ;;  %v1327_v16 = vmax.f32 %v1326_v33, %v3173_v39 }
 0x177   : > { %v3212_v42 = vpop.eup %2394  ;;  %2412 = vpow2.f32 %v1281_v30  ;;  %v1264_v7 = vmul.f32 1.442695, %v1263_v36  ;;  %v3265_v26 = vadd.f32 %v3155_v18, %v3140_v24  ;;  %v1227_v28 = vmul.f32 1.442695, %v1226_v0  ;;  %v1085_v24 = vpop.f32.mrf.mxu1  ;;  %p2642_p10 = pnand %p2641_p5, %p2635_p13 }
 0x178   : > { %v3217_v44 = vpop.eup %2396  ;;  %v1201_v45 = vmul.f32 %v3212_v42, %v1168_v14  ;;  %v1312_v46 = vmul.f32 1.442695, %v1311_v38  ;;  %v1315_v47 = vmul.f32 1.442695, %v1314_v40  ;;  %2414 = vpow2.f32 %v1295_v34 }
 0x179   : > { %v3220_v49 = vpop.eup %2398  ;;  %v1328_v50 = vsub.f32 %v1326_v33, %v1327_v16  ;;  %v1331_v51 = vsub.f32 %v3173_v39, %v1327_v16  ;;  %v3224_v54 = vmax.f32 %v1327_v16, %v3197_v22  ;;  %2416 = vpow2.f32 %v1298_v37 }
 0x17a   : > { %v3227_v35 = vadd.f32 %v3220_v49, %v1201_v45  ;;  %v1146_v55 = vadd.f32 %v3217_v44, %v1145_v17  ;;  %v2213_v20 = vpop.f32.mrf.mxu0  ;;  %2418 = vpow2.f32 %v1312_v46  ;;  %v3237_v63 = vpop.eup %2400  ;;  %v3253_v53 = vadd.f32 %v3135_v21, %v1327_v16 }
 0x17b   : > { %v1329_v59 = vmul.f32 1.442695, %v1328_v50  ;;  %v1332_v60 = vmul.f32 1.442695, %v1331_v51  ;;  %v1345_v15 = vsub.f32 %v1327_v16, %v3224_v54  ;;  %2420 = vpow2.f32 %v1315_v47  ;;  %v3239_v57 = vpop.eup %2402 }
 0x17c   : > { %v1547_v39 = vpop.f32.mrf.mxu0  ;;  %2422 = vrcp.f32 %v1146_v55  ;;  %v3248_v9 = vpop.eup %2404  ;;  %v1218_v10 = vmul.f32 %v3239_v57, %v3227_v35  ;;  %v1184_v11 = vmul.f32 %v3237_v63, %v1168_v14  ;;  %v1164_v32 = vmul.f32 %v3193_v19, %v3255_v58 }
 0x17d   : > { %v1346_v2 = vmul.f32 1.442695, %v1345_v15  ;;  %2424 = vpow2.f32 %v1329_v59  ;;  %v3270_v31 = vpop.eup %2406  ;;  %v1165_v33 = vmul.f32 %v3199_v12, %v3244_v4  ;;  %v1556_v18 = vadd.f32 %v2213_v20, %v3261_v23 }
 0x17e   : > { %v2214_v8 = vpop.f32.mrf.mxu0  ;;  %2426 = vpow2.f32 %v1332_v60  ;;  %v1185_v30 = vadd.f32 %v3248_v9, %v1184_v11  ;;  %v3277_v34 = vpop.eup %2408  ;;  %v1361_v61 = vmax.f32 %v3253_v53, %v3180_v1  ;;  %v1219_v52 = vadd.f32 %v3270_v31, %v1218_v10 }
 0x17f   : > { %2428 = vpow2.f32 %v1346_v2  ;;  %v2004_v19 = vmul.f32 -1.442695, %v1556_v18  ;;  %v1348_v12 = vsub.f32 %v3197_v22, %v3224_v54  ;;  %v1548_v37 = vadd.f32 %v3261_v23, %v1547_v39 }
 0x180   : > { %v1550_v27 = vpop.f32.mrf.mxu0  ;;  %2430 = vpow2.f32 %v1244_v3  ;;  %v1377_v16 = vadd.f32 %v3146_v25, %v3265_v26  ;;  %v3292_v17 = vadd.f32 %v3235_v62, %v1085_v24  ;;  %v1261_v45 = vmul.f32 1.442695, %v1260_v29 }
 0x181   : > { %2432 = vpow2.f32 %v1247_v6  ;;  %v3296_v46 = vadd.f32 %v1165_v33, %v1164_v32  ;;  %v2002_v47 = vmul.f32 -1.442695, %v1548_v37  ;;  %v1362_v50 = vsub.f32 %v3253_v53, %v1361_v61 }
 0x182   : > { %v2217_v14 = vpop.f32.mrf.mxu0  ;;  %2434 = vpow2.f32 %v1264_v7  ;;  %v3282_v36 = vpop.eup %2410  ;;  %v1365_v51 = vsub.f32 %v3180_v1, %v1361_v61  ;;  %v1559_v25 = vadd.f32 %v2214_v8, %v3261_v23  ;;  %v1349_v55 = vmul.f32 1.442695, %v1348_v12 }
 0x183   : > { %2436 = vrcp.f32 %v1185_v30  ;;  %v1378_v56 = vmax.f32 %v1361_v61, %v1377_v16  ;;  %v1394_v20 = vadd.f32 %v3135_v21, %v1361_v61  ;;  %v1551_v59 = vadd.f32 %v3261_v23, %v1550_v27 }
 0x184   : > { %v1563_v38 = vpop.f32.mrf.mxu0  ;;  %v3287_v40 = vpop.eup %2412  ;;  %2438 = vpow2.f32 %v1227_v28  ;;  %v1199_v15 = vmul.f32 %v3220_v49, %v3292_v17  ;;  %v2005_v39 = vmul.f32 -1.442695, %v1559_v25  ;;  %v1198_v1 = vmul.f32 %v3212_v42, %v3296_v46 }
 0x185   : > { %v3294_v43 = vpop.eup %2414  ;;  %2440 = vpow2.f32 %v2004_v19  ;;  %v1379_v2 = vsub.f32 %v1361_v61, %v1378_v56  ;;  %v1382_v3 = vsub.f32 %v1377_v16, %v1378_v56  ;;  %v1366_v21 = vmul.f32 1.442695, %v1365_v51  ;;  %v3323_v42 = vpop.f32.mrf.mxu1 }
 0x186   : > { %v3298_v22 = vpop.eup %2416  ;;  %2442 = vrcp.f32 %v1219_v52  ;;  %v2218_v54 = vpop.f32.mrf.mxu0  ;;  %v1395_v7 = vmax.f32 %v1394_v20, %v3265_v26  ;;  %v2003_v8 = vmul.f32 -1.442695, %v1551_v59  ;;  %v1363_v49 = vmul.f32 1.442695, %v1362_v50 }
 0x187   : > { %v3303_v48 = vpop.eup %2418  ;;  %2444 = vpow2.f32 %v2002_v47  ;;  %v1572_v11 = vadd.f32 %v2217_v14, %v3261_v23  ;;  %v1380_v28 = vmul.f32 1.442695, %v1379_v2  ;;  %v1383_v30 = vmul.f32 1.442695, %v1382_v3 }
 0x188   : > { %v3307_v60 = vpop.eup %2420  ;;  %2446 = vpow2.f32 %v1261_v45  ;;  %v1566_v10 = vpop.f32.mrf.mxu0  ;;  %1409 = vst [vmem:[#allocation8] sm:$0xff] %v1395_v7  ;;  %v1399_v32 = vsub.f32 %v3265_v26, %v1395_v7  ;;  %v1564_v33 = vadd.f32 %v3261_v23, %v1563_v38  ;;  %v3334_v14 = vadd.f32 %v3210_v41, %v3235_v62 }
 0x189   : > { %v3311_v0 = vpop.eup %2422  ;;  %2448 = vpow2.f32 %v2005_v39  ;;  %v1567_v24 = vadd.f32 %v3261_v23, %v1566_v10  ;;  %v3336_v61 = vadd.f32 %v1199_v15, %v1198_v1  ;;  %v1396_v52 = vsub.f32 %v1394_v20, %v1395_v7  ;;  %v1098_v45 = vpop.f32.mrf.mxu1 }
 0x18a   : > { %v3315_v6 = vpop.eup %2424  ;;  %2450 = vpow2.f32 %v1349_v55  ;;  %v2008_v12 = vmul.f32 -1.442695, %v1572_v11  ;;  %v2006_v37 = vmul.f32 -1.442695, %v1564_v33  ;;  %v1575_v26 = vadd.f32 %v2218_v54, %v3261_v23 }
 0x18b   : > { %v3318_v53 = vpop.eup %2426  ;;  %2452 = vpow2.f32 %v2003_v8  ;;  %v1233_v38 = vmul.f32 %v3277_v34, %v3334_v14  ;;  %v2007_v47 = vmul.f32 -1.442695, %v1567_v24  ;;  %v1400_v50 = vmul.f32 1.442695, %v1399_v32  ;;  %v3352_v1 = vpop.f32.mrf.mxu1 }
 0x18c   : > { %v3321_v27 = vpop.eup %2428  ;;  %2454 = vpow2.f32 %v1366_v21  ;;  %v1397_v56 = vmul.f32 1.442695, %v1396_v52  ;;  %v3349_v23 = vadd.f32 %v3246_v5, %v3235_v62  ;;  %v2009_v54 = vmul.f32 -1.442695, %v1575_v26 }
 0x18d   : > { %v3325_v29 = vpop.eup %2430  ;;  %2456 = vpow2.f32 %v1363_v49  ;;  %v3357_v8 = vadd.f32 %v3235_v62, %v1098_v45 }
 0x18e   : > { %v3330_v18 = vpop.eup %2432  ;;  %2458 = vpow2.f32 %v1380_v28 }
 0x18f   : > { %v2435_v19 = vpop.eup %2434  ;;  %2460 = vpow2.f32 %v1383_v30  ;;  %v1101_v30 = vpop.f32.mrf.mxu1  ;;  %v1301_v52 = vmul.f32 %v3298_v22, %v3357_v8 }
 0x190   : > { %v3339_v16 = vpop.eup %2436  ;;  %2462 = vpow2.f32 %v2006_v37  ;;  %v1143_v37 = vmul.f32 %v3217_v44, %v3244_v4 }
 0x191   : > { %v2439_v41 = vpop.eup %2438  ;;  %2464 = vpow2.f32 %v2008_v12  ;;  %v1142_v12 = vmul.f32 %v3204_v13, %v3255_v58 }
 0x192   : > { %v2441_v51 = vpop.eup %2440  ;;  %v1232_v25 = vmul.f32 %v2439_v41, %v3336_v61  ;;  %v1235_v55 = vmul.f32 %v2439_v41, %v3227_v35  ;;  %2466 = vpow2.f32 %v2007_v47  ;;  %v1267_v35 = vmul.f32 %v2435_v19, %v3349_v23 }
 0x193   : > { %v3345_v20 = vpop.eup %2442  ;;  %v1604_v39 = vadd.f32 1.0, %v2441_v51  ;;  %2468 = vpow2.f32 %v1400_v50  ;;  %v1144_v51 = vadd.f32 %v1143_v37, %v1142_v12 }
 0x194   : > { %v1234_v59 = vadd.f32 %v1233_v38, %v1232_v25  ;;  %v1236_v15 = vadd.f32 %v3277_v34, %v1235_v55  ;;  %v2445_v2 = vpop.eup %2444  ;;  %2470 = vpow2.f32 %v1397_v56 }
 0x195   : > { %v2447_v3 = vpop.eup %2446  ;;  %v1602_v7 = vadd.f32 1.0, %v2445_v2  ;;  %2472 = vpow2.f32 %v2009_v54  ;;  %v1216_v54 = vmul.f32 %v3270_v31, %v3334_v14  ;;  %v1148_v12 = vmul.f32 %v3311_v0, %v1144_v51 }
 0x196   : > { %v1252_v21 = vmul.f32 %v3325_v29, %v1236_v15  ;;  %v2449_v5 = vpop.eup %2448  ;;  %v1266_v10 = vmul.f32 %v2447_v3, %v1234_v59  ;;  %v1269_v49 = vmul.f32 %v2447_v3, %v1236_v15  ;;  %2474 = vrcp.f32 %v1604_v39 }
 0x197   : > { %v3359_v34 = vpop.eup %2450  ;;  %v1605_v28 = vadd.f32 1.0, %v2449_v5  ;;  %2476 = vrcp.f32 %v1602_v7  ;;  %v3393_v15 = vadd.f32 %v3323_v42, %v3235_v62 }
 0x198   : > { %v1253_v11 = vadd.f32 %v3330_v18, %v1252_v21  ;;  %v2453_v32 = vpop.eup %2452  ;;  %v3362_v33 = vadd.f32 %v1267_v35, %v1266_v10  ;;  %v1270_v24 = vadd.f32 %v2435_v19, %v1269_v49  ;;  %v3374_v19 = vadd.f32 %v3235_v62, %v1101_v30 }
 0x199   : > { %v1603_v26 = vadd.f32 1.0, %v2453_v32  ;;  %v2455_v38 = vpop.eup %2454  ;;  %v1181_v35 = vmul.f32 %v3237_v63, %v3296_v46 }
 0x19a   : > { %2478 = vrcp.f32 %v1253_v11  ;;  %v1286_v45 = vmul.f32 %v3282_v36, %v1270_v24  ;;  %v1300_v47 = vmul.f32 %v3294_v43, %v3362_v33  ;;  %v2457_v41 = vpop.eup %2456  ;;  %v1303_v50 = vmul.f32 %v3294_v43, %v1270_v24 }
 0x19b   : > { %2480 = vrcp.f32 %v1605_v28  ;;  %v3377_v13 = vpop.eup %2458  ;;  %v1335_v44 = vmul.f32 %v3318_v53, %v3374_v19  ;;  %v1182_v43 = vmul.f32 %v3248_v9, %v3292_v17  ;;  %v1215_v9 = vmul.f32 %v3239_v57, %v3336_v61 }
 0x19c   : > { %2482 = vrcp.f32 %v1603_v26  ;;  %v3379_v58 = vadd.f32 %v1301_v52, %v1300_v47  ;;  %v3383_v4 = vpop.eup %2460  ;;  %v1287_v25 = vadd.f32 %v3287_v40, %v1286_v45  ;;  %v1304_v55 = vadd.f32 %v3298_v22, %v1303_v50 }
 0x19d   : > { %v2463_v56 = vpop.eup %2462  ;;  %v1249_v17 = vmul.f32 %v3325_v29, %v1234_v59  ;;  %v1369_v42 = vmul.f32 %v2455_v38, %v3393_v15  ;;  %v3413_v57 = vadd.f32 %v3352_v1, %v3235_v62  ;;  %v1183_v30 = vadd.f32 %v1182_v43, %v1181_v35 }
 0x19e   : > { %v1334_v39 = vmul.f32 %v3315_v6, %v3379_v58  ;;  %v2465_v2 = vpop.eup %2464  ;;  %v1320_v22 = vmul.f32 %v3303_v48, %v1304_v55  ;;  %v1337_v3 = vmul.f32 %v3315_v6, %v1304_v55  ;;  %v1606_v21 = vadd.f32 1.0, %v2463_v56 }
 0x19f   : > { %v2467_v31 = vpop.eup %2466  ;;  %2484 = vrcp.f32 %v1287_v25  ;;  %v1250_v6 = vmul.f32 %v3330_v18, %v3349_v23  ;;  %v1608_v59 = vadd.f32 1.0, %v2465_v2  ;;  %v1217_v23 = vadd.f32 %v1216_v54, %v1215_v9 }
 0x1a0   : > { %v3405_v14 = vadd.f32 %v1335_v44, %v1334_v39  ;;  %v2469_v7 = vpop.eup %2468  ;;  %v1321_v5 = vadd.f32 %v3307_v60, %v1320_v22  ;;  %v1607_v63 = vadd.f32 1.0, %v2467_v31  ;;  %v1338_v46 = vadd.f32 %v3318_v53, %v1337_v3 }
 0x1a1   : > { %v2471_v10 = vpop.eup %2470  ;;  %2486 = vrcp.f32 %v1606_v21  ;;  %v1403_v53 = vmul.f32 %v2469_v7, %v3413_v57  ;;  %v1251_v24 = vadd.f32 %v1250_v6, %v1249_v17  ;;  %v1187_v37 = vmul.f32 %v3339_v16, %v1183_v30 }
 0x1a2   : > { %v1368_v29 = vmul.f32 %v2457_v41, %v3405_v14  ;;  %v2473_v61 = vpop.eup %2472  ;;  %2488 = vrcp.f32 %v1321_v5  ;;  %v1354_v49 = vmul.f32 %v3321_v27, %v1338_v46  ;;  %v1371_v11 = vmul.f32 %v2457_v41, %v1338_v46 }
 0x1a3   : > { %v2475_v28 = vpop.eup %2474  ;;  %2490 = vrcp.f32 %v1607_v63  ;;  %v1609_v45 = vadd.f32 1.0, %v2473_v61  ;;  %v1221_v55 = vmul.f32 %v3345_v20, %v1217_v23  ;;  %v1283_v39 = vmul.f32 %v3282_v36, %v3362_v33 }
 0x1a4   : > { %v1370_v32 = vadd.f32 %v1369_v42, %v1368_v29  ;;  %v2477_v18 = vpop.eup %2476  ;;  %v1355_v62 = vadd.f32 %v3359_v34, %v1354_v49  ;;  %v1372_v1 = vadd.f32 %v2455_v38, %v1371_v11  ;;  %2492 = vrcp.f32 %v1608_v59 }
 0x1a5   : > { %v1634_v54 = vmul.f32 %v2477_v18, %v1148_v12  ;;  %v1636_v16 = vmul.f32 %v2475_v28, %v1221_v55  ;;  %v1317_v2 = vmul.f32 %v3303_v48, %v3379_v58  ;;  %v1284_v22 = vmul.f32 %v3287_v40, %v3357_v8 }
 0x1a6   : > { %v1402_v26 = vmul.f32 %v2471_v10, %v1370_v32  ;;  %v1388_v50 = vmul.f32 %v3377_v13, %v1372_v1  ;;  %v1405_v44 = vmul.f32 %v2471_v10, %v1372_v1  ;;  %2494 = vrcp.f32 %v1355_v62 }
 0x1a7   : > { %v2479_v52 = vpop.eup %2478  ;;  %2496 = vrcp.f32 %v1609_v45  ;;  %v1318_v3 = vmul.f32 %v3307_v60, %v3374_v19  ;;  %v1285_v9 = vadd.f32 %v1284_v22, %v1283_v39  ;;  %v1351_v58 = vmul.f32 %v3321_v27, %v3405_v14 }
 0x1a8   : > { %v2481_v47 = vpop.eup %2480  ;;  %v1255_v41 = vmul.f32 %v2479_v52, %v1251_v24  ;;  %v1404_v56 = vadd.f32 %v1403_v53, %v1402_v26  ;;  %v1389_v0 = vadd.f32 %v3383_v4, %v1388_v50  ;;  %v1406_v51 = vadd.f32 %v2469_v7, %v1405_v44 }
 0x1a9   : > { %v2483_v25 = vpop.eup %2482  ;;  %v1319_v17 = vadd.f32 %v1318_v3, %v1317_v2  ;;  %v1385_v7 = vmul.f32 %v3377_v13, %v1370_v32  ;;  %v1352_v60 = vmul.f32 %v3359_v34, %v3393_v15  ;;  %v1386_v19 = vmul.f32 %v3383_v4, %v3413_v57  ;;  %v2010_v34 = vld [vmem:[%s3558_s23] ss:$0 sm:$0xff] }
 0x1aa   : > { %v1635_v38 = vmul.f32 %v2483_v25, %v1187_v37  ;;  %v1637_v43 = vmul.f32 %v2481_v47, %v1255_v41  ;;  %1407 = vst [vmem:[#allocation6] sm:$0xff] %v1404_v56  ;;  %2498 = vrcp.f32 %v1389_v0  ;;  %1408 = vst [vmem:[#allocation7] sm:$0xff] %v1406_v51 }
 0x1ab   : > { %v1353_v6 = vadd.f32 %v1352_v60, %v1351_v58  ;;  %v1387_v29 = vadd.f32 %v1386_v19, %v1385_v7 }
 0x1ac   : > { %v1642_v35 = vpack.c.bf16 %v1635_v38, %v1634_v54  ;;  %v1643_v20 = vpack.c.bf16 %v1637_v43, %v1636_v16  ;;  %v2485_v21 = vpop.eup %2484 }
 0x1ad   : > { %v1289_v42 = vmul.f32 %v2485_v21, %v1285_v9 }
 0x1ae   : > { %2235 = vmatprep.mubr.bf16.mxu1 %v1642_v35  ;;  %v2487_v31 = vpop.eup %2486 }
 0x1af   : > { %2236 = vmatmul.mubr.bf16.vlgmr.msra.gmra.mxu1 %v1643_v20  ;;  %v2489_v36 = vpop.eup %2488  ;;  %v1638_v5 = vmul.f32 %v2487_v31, %v1289_v42 }
 0x1b0   : > { %v2491_v33 = vpop.eup %2490  ;;  %v1323_v48 = vmul.f32 %v2489_v36, %v1319_v17 }
 0x1b1   : > { %v2493_v8 = vpop.eup %2492 }
 0x1b2   : > { %v1639_v40 = vmul.f32 %v2491_v33, %v1323_v48 }
 0x1b3   : > { %v2495_v63 = vpop.eup %2494 }
 0x1b4   : > { %v1644_v46 = vpack.c.bf16 %v1639_v40, %v1638_v5  ;;  %v2497_v10 = vpop.eup %2496  ;;  %v1357_v59 = vmul.f32 %v2495_v63, %v1353_v6 }
 0x1b6   : > { %2239 = vmatprep.mubr.bf16.mxu1 %v1644_v46  ;;  %v1640_v13 = vmul.f32 %v2493_v8, %v1357_v59 }
 0x1b7   : > { %v2499_v61 = vpop.eup %2498 }
 0x1b8   : > { %v1391_v27 = vmul.f32 %v2499_v61, %v1387_v29 }
 0x1ba   : > { %v1641_v14 = vmul.f32 %v2497_v10, %v1391_v27 }
 0x1bc   : > { %v1645_v49 = vpack.c.bf16 %v1641_v14, %v1640_v13 }
 0x1be   : > { %2240 = vmatmul.mubr.bf16.gmra.mxu1 %v1645_v49 }
 0x26f   : > { %v2237_v11 = vpop.f32.mrf.mxu1 }
 0x270   : > { %v1760_v57 = vadd.f32 %v2237_v11, %v2010_v34 }
 0x271   : > { %v1751_v4 = vpop.f32.mrf.mxu1 }
 0x272   : > { %v1752_v53 = vadd.f32 %v2010_v34, %v1751_v4 }
 0x273   : > { %v2238_v15 = vpop.f32.mrf.mxu1 }
 0x274   : > { %v1763_v28 = vadd.f32 %v2238_v15, %v2010_v34 }
 0x275   : > { %v1754_v30 = vpop.f32.mrf.mxu1 }
 0x276   : > { %v2078_v32 = vpack.c.bf16 %v1763_v28, %v1760_v57  ;;  %v1755_v18 = vadd.f32 %v2010_v34, %v1754_v30 }
 0x278   : > { %2096 = vst [vmem:[%s2995_s7 + $0x8] sm:$0xff] %v2078_v32   ;;  %v2073_v23 = vpack.c.bf16 %v1755_v18, %v1752_v53 }
 0x27a   : > { %2074 = vst [vmem:[%s2995_s7] sm:$0xff] %v2073_v23  }
 0x27e   : > { %v2241_v24 = vpop.f32.mrf.mxu1 }
 0x27f   : > { %v1776_v52 = vadd.f32 %v2241_v24, %v2010_v34 }
 0x280   : > { %v1767_v62 = vpop.f32.mrf.mxu1 }
 0x281   : > { %v1768_v26 = vadd.f32 %v2010_v34, %v1767_v62 }
 0x282   : > { %v2242_v1 = vpop.f32.mrf.mxu1 }
 0x283   : > { %v1779_v12 = vadd.f32 %v2242_v1, %v2010_v34 }
 0x284   : > { %v1770_v37 = vpop.f32.mrf.mxu1 }
 0x285   : > { %v2088_v45 = vpack.c.bf16 %v1779_v12, %v1776_v52  ;;  %v1771_v47 = vadd.f32 %v2010_v34, %v1770_v37 }
 0x287   : > { %2098 = vst [vmem:[%s2995_s7 + $0x18] sm:$0xff] %v2088_v45   ;;  %v2083_v41 = vpack.c.bf16 %v1771_v47, %v1768_v26 }
 0x289   : > { %2097 = vst [vmem:[%s2995_s7 + $0x10] sm:$0xff] %v2083_v41  }
 0x28a   : > { %2645 = shalt.err (!%p2642_p10)
}
 0x28b   : > { %s2646_s7 = scalar_lea.hbm %s3449_s21, 512  ;;  %s2650_s30 = scalar_lea.hbm %s3559_s1, 1024 }
 0x28c   : > { %p2647_p12 = scmp.ne.s32.totalorder %s3449_s21, %s2646_s7  ;;  %p2651_p3 = scmp.lt.s32.totalorder %s3449_s21, %s3559_s1 }
 0x28d   : > { %p2652_p9 = scmp.lt.s32.totalorder %s2650_s30, %s2646_s7 }
 0x28e   : > { %p2648_p7 = pnand %p2647_p12, %p2947_p0 }
 0x28f   : > { %p2653_p8 = por %p2652_p9, %p2651_p3 }
 0x290   : > { %p2649_p6 = pneg %p2648_p7 }
 0x292   : > { %p2654_p1 = pnand %p2653_p8, %p2649_p6 }
 0x294   : > { %2657 = shalt.err (!%p2654_p1)
}
 0x295   : > { %s2732_s24 = smov 64   ;;  %s2733_s13 = smov 4  }
 0x296   : > { %2261 = dma.vmem_to_hbm [thread:$0]  (%p2947_p0), %s3451_s11, 512, %s3449_s21, %s1799_s14, %s2732_s24, %s2732_s24, %s2733_s13  }
 0x297 PF: > { %s3560_s18 = sld [smem:[#allocation24_spill]]  ;;  %p3563_p13 = scmp.ge.s32.totalorder %s2720_s29, 2 }
 0x298   : > { %s3561_s27 = sld [smem:[#allocation25_spill]] }
 0x29d   : > { %s1828_s19 = sand.u32 1, %s3560_s18  }
 0x29e   : > { %p3562_p4 = scmp.ne.s32.totalorder %s3561_s27, 0  ;;  %s1829_s16 = scalar_lea.sflag [#allocation12], %s1828_s19 }
 0x2a0   : > { %p2281_p11 = pnand %p3563_p13, %p3562_p4 }
 0x2a2   : > { %p2282_p2 = pneg %p2281_p11 }
 0x2a4   : > { %2695 = dma.done.wait (%p2282_p2), %s1829_s16, 512  }
 0x2a5   : > { %2697 = vsyncadd (%p2282_p2), %s1829_s16, 4294966784  ;;  %s35_s29 = sadd.s32 1, %s2720_s29   ;;  %s3564_s10 = sld [smem:[#allocation26_spill]] }
 0x2a6   : > { %p32_p5 = scmp.ge.s32.totalorder %s35_s29, 4   ;;  %s3565_s24 = smov %s2704_s25 }
 0x2a7   : > { %s3566_s25 = smov %s2708_s26  ;;  %s3567_s26 = smov %s2956_s17 }
 0x2a8   : > { %s3568_s27 = smov %s2716_s28  ;;  %34 = sbr.rel (!%p32_p5) target bundleno = 20 (0x14), region = 174 }
 0x2ab   : > { %s3569_s28 = smov %s3564_s10 }
 0x2ad   :  { %1834 = vsyncpa [#allocation11], 1 }
 0x2ae   :  { %1836 = vsyncpa [#allocation11 + $0x1], 1 }
 0x2af   :  { %1837 = vsyncpa [#allocation14], 1 }
 0x2b0   :  { %1838 = vsyncpa [#allocation17], 1 }
 0x2b1   :  { %1839 = vsyncpa [#allocation12], 1 }
 0x2b2   :  { %1841 = vsyncpa [#allocation12 + $0x1], 1 }

</bundles_post_ra>
